<compile_context>
chip_gen: v7x
topology: tpu7x:2x2x1
jax: 0.10.0
libtpu: 0.0.40
codegen_flags: <defaults>
</compile_context>

<pallas_src>
import functools

import jax
import jax.numpy as jnp
from jax.experimental import pallas as pl
from jax.experimental.pallas import tpu as pltpu


def self_attention_kernel(x_ref, adjeye_ref,
                          wqkv_ref, bqkv_ref,
                          w1_ref, b1_ref, w2_ref, b2_ref,
                          o_ref, *, bpg, n, dp):
    """One grid step = one group of `bpg` fused batches.  Everything in VMEM.

    x_ref      : (1, M, Dp)   fused rows, M = bpg * N, feature-padded, f32
    adjeye_ref : (N, N)       eye(N) + adj bias tile (shared by every batch)
    wqkv_ref   : (Dp, 3*Dp)   [wq*scale | wk | wv], (in, out) layout, f32 or bf16
    w1/w2      : (Dp, Dp)     feed-forward weights, same dtype as wqkv
    biases     : (1, ...)     always f32
    """
    mm_dtype = wqkv_ref.dtype                    # matmul operand dtype (f32/bf16)
    x = x_ref[0]                                 # (M, Dp) f32 residual copy

    # Fused Q/K/V projection: one MXU job instead of three; f32 accumulation.
    qkv = jnp.dot(x.astype(mm_dtype), wqkv_ref[...],
                  preferred_element_type=jnp.float32) + bqkv_ref[...]

    # Per-batch views.  M -> (bpg, N) splits the sublane axis on an 8-aligned
    # boundary (N multiple of 8 here), so the reshape is layout-preserving.
    q = qkv[:, :dp].reshape(bpg, n, dp).astype(mm_dtype)      # scale folded in
    k = qkv[:, dp:2 * dp].reshape(bpg, n, dp).astype(mm_dtype)
    v = qkv[:, 2 * dp:].reshape(bpg, n, dp).astype(mm_dtype)

    # Per-batch scores: no cross-batch entries are ever computed or masked.
    corr = jnp.einsum('bqd,bkd->bqk', q, k,
                      preferred_element_type=jnp.float32)      # (bpg, N, N) f32
    corr = corr + adjeye_ref[...]                              # broadcast (N,N)

    # Row softmax, statistics in f32.
    corr = corr - jnp.max(corr, axis=-1, keepdims=True)
    e = jnp.exp(corr)
    s = jnp.sum(e, axis=-1, keepdims=True)
    r = pl.reciprocal(s, approx=True)            # EUP slot (free under MXU)
    r = r * (2.0 - s * r)                        # one Newton step -> ~exact f32
    p = (e * r).astype(mm_dtype)

    pv = jnp.einsum('bqk,bkd->bqd', p, v,
                    preferred_element_type=jnp.float32)        # (bpg, N, Dp)

    # out = relu(softmax(corr) @ v) + x   (back to the fused (M, Dp) view)
    out = jnp.maximum(pv.reshape(bpg * n, dp), 0.0) + x

    # feedForward: relu(Linear2(relu(Linear1(out)))) + out
    h = jnp.dot(out.astype(mm_dtype), w1_ref[...],
                preferred_element_type=jnp.float32) + b1_ref[...]
    h = jnp.maximum(h, 0.0)
    h = jnp.dot(h.astype(mm_dtype), w2_ref[...],
                preferred_element_type=jnp.float32) + b2_ref[...]
    o_ref[0] = (jnp.maximum(h, 0.0) + out).astype(o_ref.dtype)


def _auto_num_blocks(batch, n):
    """Split the grid only when each step still fills the MXU rows (M >= 256).

    On v7x (2 TensorCores) / for DMA pipelining at large B this picks the
    largest divisor of `batch` keeping per-step M >= 256; otherwise a single
    fused step avoids the ~0.35 us/step pipeline overhead.
    """
    nb = 1
    for cand in range(2, batch + 1):
        if batch % cand == 0 and (batch // cand) * n >= 256:
            nb = cand
    return nb


def self_attention(x, adj, params, *, num_blocks=None,
                   matmul_dtype=jnp.float32, single_buffer_weights=True):
    """x: (B, N, D) f32, adj: (N, N) f32, params: dict of (in, out) weights.

    matmul_dtype: jnp.float32 (exact) or jnp.bfloat16 (v6e/v7x MXU-native
      operands; accumulation and softmax stay f32).
    """
    B, N, D = x.shape
    if num_blocks is None:
        num_blocks = _auto_num_blocks(B, N)
    assert B % num_blocks == 0, "num_blocks must divide the batch size"
    bpg = B // num_blocks                 # batches fused per grid step
    M = bpg * N                           # fused rows per grid step
    # Conscious choice (review #9): pad features to a lane-dense multiple of 128
    # so every operand/store is unmasked; at D=32 the absolute cost is tiny and
    # the zero padding propagates exactly (sliced off at the end).
    Dp = ((D + 127) // 128) * 128
    scale = jnp.float32(D) ** -0.5
    mm = jnp.dtype(matmul_dtype)

    # ---- parameter prep (pure glue; one-time in a real deployment) ----------
    def pad_w(w):                         # (D, D) -> (Dp, Dp), matmul dtype
        return jnp.pad(w, ((0, Dp - D), (0, Dp - D))).astype(mm)

    def pad_b(b):                         # (1, D) -> (1, Dp), f32
        return jnp.pad(b, ((0, 0), (0, Dp - D))).astype(jnp.float32)

    wqkv = jnp.concatenate(
        [pad_w(params["wq"] * scale), pad_w(params["wk"]), pad_w(params["wv"])],
        axis=1)                                                   # (Dp, 3*Dp)
    bqkv = jnp.concatenate(
        [pad_b(params["bq"] * scale), pad_b(params["bk"]), pad_b(params["bv"])],
        axis=1)                                                   # (1, 3*Dp)
    w1, b1 = pad_w(params["w1"]), pad_b(params["b1"])
    w2, b2 = pad_w(params["w2"]), pad_b(params["b2"])

    # Only the tiny (N, N) bias tile goes to the kernel (no dense (M, M) mask).
    adjeye = jnp.eye(N, dtype=jnp.float32) + adj.astype(jnp.float32)

    # Lane-dense input: pad features to Dp, fuse batches per grid step.
    xp = jnp.pad(x.astype(jnp.float32),
                 ((0, 0), (0, 0), (0, Dp - D))).reshape(num_blocks, M, Dp)

    kernel = functools.partial(self_attention_kernel, bpg=bpg, n=N, dp=Dp)

    # ---- VMEM budget (review #4/#7): size the scoped limit from real usage --
    act = M * Dp * 4                                    # one f32 activation slab
    wbytes = ((wqkv.size + w1.size + w2.size) * mm.itemsize
              + (bqkv.size + b1.size + b2.size) * 4)
    est = (4 * act                                      # 2x-buffered x + out blocks
           + (1 if single_buffer_weights else 2) * wbytes
           + 8 * act                                    # qkv / out / h intermediates
           + 6 * bpg * N * N * 4 + 2 * N * N * 4)       # scores / probs / bias tile
    vmem_limit = int(min(max(2 * est, 16 << 20), 64 << 20))

    cparams = pltpu.CompilerParams(dimension_semantics=("parallel",),
                                   vmem_limit_bytes=vmem_limit)

    x_spec = pl.BlockSpec((1, M, Dp), lambda i: (i, 0, 0))

    def build(weight_mode):
        def const_spec(shape):
            imap = lambda i: (0,) * len(shape)
            if weight_mode is None:
                return pl.BlockSpec(shape, imap)
            # Constant blocks never re-fetch -> single buffer (review #5).
            return pl.BlockSpec(shape, imap, pipeline_mode=weight_mode)

        in_specs = [
            x_spec,                          # fused activations
            const_spec((N, N)),              # eye(N) + adj tile
            const_spec((Dp, 3 * Dp)),        # fused qkv weight
            const_spec((1, 3 * Dp)),         # fused qkv bias
            const_spec((Dp, Dp)), const_spec((1, Dp)),   # ff linear 1
            const_spec((Dp, Dp)), const_spec((1, Dp)),   # ff linear 2
        ]
        return pl.pallas_call(
            kernel,
            out_shape=jax.ShapeDtypeStruct((num_blocks, M, Dp), x.dtype),
            grid=(num_blocks,),
            in_specs=in_specs,
            out_specs=x_spec,
            compiler_params=cparams)

    modes = []
    if single_buffer_weights and hasattr(pl, "Buffered"):
        modes.append(pl.Buffered(1))
    modes.append(None)

    last_err = None
    for mode in modes:
        try:
            out = build(mode)(xp, adjeye, wqkv, bqkv, w1, b1, w2, b2)
            out = jax.block_until_ready(out)
            # Un-fuse batches and drop the zero feature padding (exact zeros).
            return out.reshape(B, N, Dp)[..., :D]
        except Exception as e:  # e.g. pl.Buffered(1) unsupported -> double-buffer
            last_err = e
    raise last_err


def reference(x, adj, params):
    """Pure-JAX mirror of the PyTorch forward for correctness checking."""
    adjeye = jnp.eye(adj.shape[0], dtype=jnp.float32) + adj
    q = x @ params["wq"] + params["bq"]
    k = x @ params["wk"] + params["bk"]
    v = x @ params["wv"] + params["bv"]
    d = x.shape[-1]
    corr = (q @ jnp.swapaxes(k, -2, -1)) * (d ** -0.5)
    corr = jax.nn.softmax(corr + adjeye, axis=-1)
    out = jax.nn.relu(corr @ v) + x
    h = jax.nn.relu(out @ params["w1"] + params["b1"]) @ params["w2"] + params["b2"]
    return jax.nn.relu(h) + out


def init_params(key, dim):
    ks = jax.random.split(key, 10)
    s = 1.0 / jnp.sqrt(dim)

    def w(k):
        return jax.random.uniform(k, (dim, dim), jnp.float32, -s, s)

    def b(k):
        return jax.random.uniform(k, (1, dim), jnp.float32, -s, s)

    return {
        "wq": w(ks[0]), "bq": b(ks[1]),
        "wk": w(ks[2]), "bk": b(ks[3]),
        "wv": w(ks[4]), "bv": b(ks[5]),
        "w1": w(ks[6]), "b1": b(ks[7]),
        "w2": w(ks[8]), "b2": b(ks[9]),
    }


if __name__ == "__main__":
    B, N, D = 2, 8, 32  # batch, graph nodes (adj is N x N), feature dim

    key = jax.random.PRNGKey(0)
    kx, kadj, kp = jax.random.split(key, 3)

    x = jax.random.normal(kx, (B, N, D), dtype=jnp.float32)
    adj = (jax.random.uniform(kadj, (N, N)) > 0.5).astype(jnp.float32)
    params = init_params(kp, D)

    ref = reference(x, adj, params)

    # Default: auto num_blocks (-> 1 single fused step here), f32 MXU operands.
    out = jax.block_until_ready(self_attention(x, adj, params))
    assert out.shape == (B, N, D)
    assert jnp.allclose(out, ref, atol=2e-3, rtol=2e-3), "mismatch (f32 path)"

    # Explicit 2-step grid (one batch group per step) to exercise the pipeline.
    out2 = jax.block_until_ready(self_attention(x, adj, params, num_blocks=2))
    assert jnp.allclose(out2, ref, atol=2e-3, rtol=2e-3), "mismatch (grid path)"

    # bf16 MXU-operand path (v6e/v7x throughput mode); accumulation stays f32.
    out_bf = jax.block_until_ready(
        self_attention(x, adj, params, matmul_dtype=jnp.bfloat16))
    assert jnp.allclose(out_bf, ref, atol=0.15, rtol=0.1), "mismatch (bf16 path)"

    print("KERNEL_OK")
</pallas_src>

<mosaic_0001>
module attributes {stable_mosaic.version = 11 : i64} {
  func.func @self_attention_kernel(%arg0: i32, %arg1: memref<1x16x128xf32, #tpu.memory_space<vmem>>, %arg2: memref<8x8xf32, #tpu.memory_space<vmem>>, %arg3: memref<128x384xf32, #tpu.memory_space<vmem>>, %arg4: memref<1x384xf32, #tpu.memory_space<vmem>>, %arg5: memref<128x128xf32, #tpu.memory_space<vmem>>, %arg6: memref<1x128xf32, #tpu.memory_space<vmem>>, %arg7: memref<128x128xf32, #tpu.memory_space<vmem>>, %arg8: memref<1x128xf32, #tpu.memory_space<vmem>>, %arg9: memref<1x16x128xf32, #tpu.memory_space<vmem>>) attributes {dimension_semantics = [#tpu.dimension_semantics<parallel>], iteration_bounds = array<i64: 1>, scalar_prefetch = 0 : i64, scratch_operands = 0 : i64, tpu.core_type = #tpu.core_type<tc>, window_params = [{transform_indices = @transform_0, window_bounds = array<i64: 1, 16, 128>}, {pipeline_mode = #tpu.pipeline_mode<synchronous>, transform_indices = @transform_1, window_bounds = array<i64: 8, 8>}, {pipeline_mode = #tpu.pipeline_mode<synchronous>, transform_indices = @transform_2, window_bounds = array<i64: 128, 384>}, {pipeline_mode = #tpu.pipeline_mode<synchronous>, transform_indices = @transform_3, window_bounds = array<i64: 1, 384>}, {pipeline_mode = #tpu.pipeline_mode<synchronous>, transform_indices = @transform_4, window_bounds = array<i64: 128, 128>}, {pipeline_mode = #tpu.pipeline_mode<synchronous>, transform_indices = @transform_5, window_bounds = array<i64: 1, 128>}, {pipeline_mode = #tpu.pipeline_mode<synchronous>, transform_indices = @transform_6, window_bounds = array<i64: 128, 128>}, {pipeline_mode = #tpu.pipeline_mode<synchronous>, transform_indices = @transform_7, window_bounds = array<i64: 1, 128>}, {transform_indices = @transform_8, window_bounds = array<i64: 1, 16, 128>}]} {
    %c0 = arith.constant 0 : index
    %c0_0 = arith.constant 0 : index
    %c0_1 = arith.constant 0 : index
    %0 = vector.load %arg1[%c0, %c0_0, %c0_1] : memref<1x16x128xf32, #tpu.memory_space<vmem>>, vector<1x16x128xf32>
    %1 = vector.shape_cast %0 : vector<1x16x128xf32> to vector<16x128xf32>
    %c0_2 = arith.constant 0 : index
    %c0_3 = arith.constant 0 : index
    %2 = vector.load %arg3[%c0_2, %c0_3] : memref<128x384xf32, #tpu.memory_space<vmem>>, vector<128x384xf32>
    %cst = arith.constant dense<0.000000e+00> : vector<16x384xf32>
    %3 = tpu.matmul %1, %2, %cst {dimension_numbers = #tpu.dot_dimension_numbers<[1], [0], [0], [1], [0, 0, 1, 1], [], []>} : vector<16x128xf32>, vector<128x384xf32>, vector<16x384xf32> -> vector<16x384xf32>
    %c0_4 = arith.constant 0 : index
    %c0_5 = arith.constant 0 : index
    %4 = vector.load %arg4[%c0_4, %c0_5] : memref<1x384xf32, #tpu.memory_space<vmem>>, vector<1x384xf32>
    %5 = vector.broadcast %4 : vector<1x384xf32> to vector<16x384xf32>
    %6 = arith.addf %3, %5 : vector<16x384xf32>
    %7 = vector.extract_strided_slice %6 {offsets = [0, 0], sizes = [16, 128], strides = [1, 1]} : vector<16x384xf32> to vector<16x128xf32>
    %8 = vector.shape_cast %7 : vector<16x128xf32> to vector<2x8x128xf32>
    %9 = vector.extract_strided_slice %6 {offsets = [0, 128], sizes = [16, 128], strides = [1, 1]} : vector<16x384xf32> to vector<16x128xf32>
    %10 = vector.shape_cast %9 : vector<16x128xf32> to vector<2x8x128xf32>
    %11 = vector.extract_strided_slice %6 {offsets = [0, 256], sizes = [16, 128], strides = [1, 1]} : vector<16x384xf32> to vector<16x128xf32>
    %12 = vector.shape_cast %11 : vector<16x128xf32> to vector<2x8x128xf32>
    "tpu.trace_start"() <{level = 10 : i32, message = "bqd,bkd->bqk"}> : () -> ()
    %cst_6 = arith.constant dense<0.000000e+00> : vector<2x8x8xf32>
    %13 = tpu.matmul %8, %10, %cst_6 {dimension_numbers = #tpu.dot_dimension_numbers<[2], [2], [1], [1], [0, 0, 0, 1, 1, 1], [0], [0]>} : vector<2x8x128xf32>, vector<2x8x128xf32>, vector<2x8x8xf32> -> vector<2x8x8xf32>
    "tpu.trace_stop"() : () -> ()
    %c0_7 = arith.constant 0 : index
    %c0_8 = arith.constant 0 : index
    %14 = vector.load %arg2[%c0_7, %c0_8] : memref<8x8xf32, #tpu.memory_space<vmem>>, vector<8x8xf32>
    %15 = vector.shape_cast %14 : vector<8x8xf32> to vector<1x8x8xf32>
    %16 = vector.broadcast %15 : vector<1x8x8xf32> to vector<2x8x8xf32>
    %17 = arith.addf %13, %16 : vector<2x8x8xf32>
    %cst_9 = arith.constant dense<0xFF800000> : vector<2x8xf32>
    %18 = vector.multi_reduction <maximumf>, %17, %cst_9 [2] : vector<2x8x8xf32> to vector<2x8xf32>
    %19 = vector.shape_cast %18 : vector<2x8xf32> to vector<2x8x1xf32>
    %20 = vector.broadcast %19 : vector<2x8x1xf32> to vector<2x8x8xf32>
    %21 = arith.subf %17, %20 : vector<2x8x8xf32>
    %22 = math.exp %21 : vector<2x8x8xf32>
    %cst_10 = arith.constant dense<0.000000e+00> : vector<2x8xf32>
    %23 = vector.multi_reduction <add>, %22, %cst_10 [2] : vector<2x8x8xf32> to vector<2x8xf32>
    %24 = vector.shape_cast %23 : vector<2x8xf32> to vector<2x8x1xf32>
    %25 = tpu.reciprocal %24 {approx = true} : vector<2x8x1xf32> -> vector<2x8x1xf32>
    %26 = arith.mulf %24, %25 : vector<2x8x1xf32>
    %cst_11 = arith.constant 2.000000e+00 : f32
    %27 = vector.broadcast %cst_11 : f32 to vector<2x8x1xf32>
    %28 = arith.subf %27, %26 : vector<2x8x1xf32>
    %29 = arith.mulf %25, %28 : vector<2x8x1xf32>
    %30 = vector.broadcast %29 : vector<2x8x1xf32> to vector<2x8x8xf32>
    %31 = arith.mulf %22, %30 : vector<2x8x8xf32>
    "tpu.trace_start"() <{level = 10 : i32, message = "bqk,bkd->bqd"}> : () -> ()
    %cst_12 = arith.constant dense<0.000000e+00> : vector<2x8x128xf32>
    %32 = tpu.matmul %31, %12, %cst_12 {dimension_numbers = #tpu.dot_dimension_numbers<[2], [1], [1], [2], [0, 0, 0, 1, 1, 2], [0], [0]>} : vector<2x8x8xf32>, vector<2x8x128xf32>, vector<2x8x128xf32> -> vector<2x8x128xf32>
    "tpu.trace_stop"() : () -> ()
    %33 = vector.shape_cast %32 : vector<2x8x128xf32> to vector<16x128xf32>
    %cst_13 = arith.constant 0.000000e+00 : f32
    %34 = vector.broadcast %cst_13 : f32 to vector<16x128xf32>
    %35 = arith.maximumf %33, %34 : vector<16x128xf32>
    %36 = arith.addf %35, %1 : vector<16x128xf32>
    %c0_14 = arith.constant 0 : index
    %c0_15 = arith.constant 0 : index
    %37 = vector.load %arg5[%c0_14, %c0_15] : memref<128x128xf32, #tpu.memory_space<vmem>>, vector<128x128xf32>
    %cst_16 = arith.constant dense<0.000000e+00> : vector<16x128xf32>
    %38 = tpu.matmul %36, %37, %cst_16 {dimension_numbers = #tpu.dot_dimension_numbers<[1], [0], [0], [1], [0, 0, 1, 1], [], []>} : vector<16x128xf32>, vector<128x128xf32>, vector<16x128xf32> -> vector<16x128xf32>
    %c0_17 = arith.constant 0 : index
    %c0_18 = arith.constant 0 : index
    %39 = vector.load %arg6[%c0_17, %c0_18] : memref<1x128xf32, #tpu.memory_space<vmem>>, vector<1x128xf32>
    %40 = vector.broadcast %39 : vector<1x128xf32> to vector<16x128xf32>
    %41 = arith.addf %38, %40 : vector<16x128xf32>
    %cst_19 = arith.constant 0.000000e+00 : f32
    %42 = vector.broadcast %cst_19 : f32 to vector<16x128xf32>
    %43 = arith.maximumf %41, %42 : vector<16x128xf32>
    %c0_20 = arith.constant 0 : index
    %c0_21 = arith.constant 0 : index
    %44 = vector.load %arg7[%c0_20, %c0_21] : memref<128x128xf32, #tpu.memory_space<vmem>>, vector<128x128xf32>
    %cst_22 = arith.constant dense<0.000000e+00> : vector<16x128xf32>
    %45 = tpu.matmul %43, %44, %cst_22 {dimension_numbers = #tpu.dot_dimension_numbers<[1], [0], [0], [1], [0, 0, 1, 1], [], []>} : vector<16x128xf32>, vector<128x128xf32>, vector<16x128xf32> -> vector<16x128xf32>
    %c0_23 = arith.constant 0 : index
    %c0_24 = arith.constant 0 : index
    %46 = vector.load %arg8[%c0_23, %c0_24] : memref<1x128xf32, #tpu.memory_space<vmem>>, vector<1x128xf32>
    %47 = vector.broadcast %46 : vector<1x128xf32> to vector<16x128xf32>
    %48 = arith.addf %45, %47 : vector<16x128xf32>
    %cst_25 = arith.constant 0.000000e+00 : f32
    %49 = vector.broadcast %cst_25 : f32 to vector<16x128xf32>
    %50 = arith.maximumf %48, %49 : vector<16x128xf32>
    %51 = arith.addf %50, %36 : vector<16x128xf32>
    %c0_26 = arith.constant 0 : index
    %c0_27 = arith.constant 0 : index
    %c0_28 = arith.constant 0 : index
    %52 = vector.load %arg9[%c0_26, %c0_27, %c0_28] : memref<1x16x128xf32, #tpu.memory_space<vmem>>, vector<1x16x128xf32>
    %53 = vector.shape_cast %52 : vector<1x16x128xf32> to vector<16x128xf32>
    %54 = vector.shape_cast %51 : vector<16x128xf32> to vector<1x16x128xf32>
    tpu.vector_store %arg9[%c0_26, %c0_27, %c0_28], %54 {strides = array<i32>} : memref<1x16x128xf32, #tpu.memory_space<vmem>>, vector<1x16x128xf32>,
    return
  }
  func.func @transform_0(%arg0: i32) -> (i32, i32, i32) {
    %c0_i32 = arith.constant 0 : i32
    %c0_i32_0 = arith.constant 0 : i32
    %c0_i32_1 = arith.constant 0 : i32
    return %arg0, %c0_i32, %c0_i32_0 : i32, i32, i32
  }
  func.func @transform_1(%arg0: i32) -> (i32, i32) {
    %c0_i32 = arith.constant 0 : i32
    %c0_i32_0 = arith.constant 0 : i32
    %c0_i32_1 = arith.constant 0 : i32
    return %c0_i32, %c0_i32_0 : i32, i32
  }
  func.func @transform_2(%arg0: i32) -> (i32, i32) {
    %c0_i32 = arith.constant 0 : i32
    %c0_i32_0 = arith.constant 0 : i32
    %c0_i32_1 = arith.constant 0 : i32
    return %c0_i32, %c0_i32_0 : i32, i32
  }
  func.func @transform_3(%arg0: i32) -> (i32, i32) {
    %c0_i32 = arith.constant 0 : i32
    %c0_i32_0 = arith.constant 0 : i32
    %c0_i32_1 = arith.constant 0 : i32
    return %c0_i32, %c0_i32_0 : i32, i32
  }
  func.func @transform_4(%arg0: i32) -> (i32, i32) {
    %c0_i32 = arith.constant 0 : i32
    %c0_i32_0 = arith.constant 0 : i32
    %c0_i32_1 = arith.constant 0 : i32
    return %c0_i32, %c0_i32_0 : i32, i32
  }
  func.func @transform_5(%arg0: i32) -> (i32, i32) {
    %c0_i32 = arith.constant 0 : i32
    %c0_i32_0 = arith.constant 0 : i32
    %c0_i32_1 = arith.constant 0 : i32
    return %c0_i32, %c0_i32_0 : i32, i32
  }
  func.func @transform_6(%arg0: i32) -> (i32, i32) {
    %c0_i32 = arith.constant 0 : i32
    %c0_i32_0 = arith.constant 0 : i32
    %c0_i32_1 = arith.constant 0 : i32
    return %c0_i32, %c0_i32_0 : i32, i32
  }
  func.func @transform_7(%arg0: i32) -> (i32, i32) {
    %c0_i32 = arith.constant 0 : i32
    %c0_i32_0 = arith.constant 0 : i32
    %c0_i32_1 = arith.constant 0 : i32
    return %c0_i32, %c0_i32_0 : i32, i32
  }
  func.func @transform_8(%arg0: i32) -> (i32, i32, i32) {
    %c0_i32 = arith.constant 0 : i32
    %c0_i32_0 = arith.constant 0 : i32
    %c0_i32_1 = arith.constant 0 : i32
    return %arg0, %c0_i32, %c0_i32_0 : i32, i32, i32
  }
}

module attributes {stable_mosaic.version = 11 : i64} {
  func.func @self_attention_kernel(%arg0: i32, %arg1: memref<1x16x128xf32, #tpu.memory_space<vmem>>, %arg2: memref<8x8xf32, #tpu.memory_space<vmem>>, %arg3: memref<128x384xf32, #tpu.memory_space<vmem>>, %arg4: memref<1x384xf32, #tpu.memory_space<vmem>>, %arg5: memref<128x128xf32, #tpu.memory_space<vmem>>, %arg6: memref<1x128xf32, #tpu.memory_space<vmem>>, %arg7: memref<128x128xf32, #tpu.memory_space<vmem>>, %arg8: memref<1x128xf32, #tpu.memory_space<vmem>>, %arg9: memref<1x16x128xf32, #tpu.memory_space<vmem>>) attributes {dimension_semantics = [#tpu.dimension_semantics<parallel>], iteration_bounds = array<i64: 1>, scalar_prefetch = 0 : i64, scratch_operands = 0 : i64, tpu.core_type = #tpu.core_type<tc>, window_params = [{transform_indices = @transform_0, window_bounds = array<i64: 1, 16, 128>}, {pipeline_mode = #tpu.pipeline_mode<synchronous>, transform_indices = @transform_1, window_bounds = array<i64: 8, 8>}, {pipeline_mode = #tpu.pipeline_mode<synchronous>, transform_indices = @transform_2, window_bounds = array<i64: 128, 384>}, {pipeline_mode = #tpu.pipeline_mode<synchronous>, transform_indices = @transform_3, window_bounds = array<i64: 1, 384>}, {pipeline_mode = #tpu.pipeline_mode<synchronous>, transform_indices = @transform_4, window_bounds = array<i64: 128, 128>}, {pipeline_mode = #tpu.pipeline_mode<synchronous>, transform_indices = @transform_5, window_bounds = array<i64: 1, 128>}, {pipeline_mode = #tpu.pipeline_mode<synchronous>, transform_indices = @transform_6, window_bounds = array<i64: 128, 128>}, {pipeline_mode = #tpu.pipeline_mode<synchronous>, transform_indices = @transform_7, window_bounds = array<i64: 1, 128>}, {transform_indices = @transform_8, window_bounds = array<i64: 1, 16, 128>}]} {
    %c0 = arith.constant 0 : index
    %c0_0 = arith.constant 0 : index
    %c0_1 = arith.constant 0 : index
    %0 = vector.load %arg1[%c0, %c0_0, %c0_1] : memref<1x16x128xf32, #tpu.memory_space<vmem>>, vector<1x16x128xf32>
    %1 = vector.shape_cast %0 : vector<1x16x128xf32> to vector<16x128xf32>
    %c0_2 = arith.constant 0 : index
    %c0_3 = arith.constant 0 : index
    %2 = vector.load %arg3[%c0_2, %c0_3] : memref<128x384xf32, #tpu.memory_space<vmem>>, vector<128x384xf32>
    %cst = arith.constant dense<0.000000e+00> : vector<16x384xf32>
    %3 = tpu.matmul %1, %2, %cst {dimension_numbers = #tpu.dot_dimension_numbers<[1], [0], [0], [1], [0, 0, 1, 1], [], []>} : vector<16x128xf32>, vector<128x384xf32>, vector<16x384xf32> -> vector<16x384xf32>
    %c0_4 = arith.constant 0 : index
    %c0_5 = arith.constant 0 : index
    %4 = vector.load %arg4[%c0_4, %c0_5] : memref<1x384xf32, #tpu.memory_space<vmem>>, vector<1x384xf32>
    %5 = vector.broadcast %4 : vector<1x384xf32> to vector<16x384xf32>
    %6 = arith.addf %3, %5 : vector<16x384xf32>
    %7 = vector.extract_strided_slice %6 {offsets = [0, 0], sizes = [16, 128], strides = [1, 1]} : vector<16x384xf32> to vector<16x128xf32>
    %8 = vector.shape_cast %7 : vector<16x128xf32> to vector<2x8x128xf32>
    %9 = vector.extract_strided_slice %6 {offsets = [0, 128], sizes = [16, 128], strides = [1, 1]} : vector<16x384xf32> to vector<16x128xf32>
    %10 = vector.shape_cast %9 : vector<16x128xf32> to vector<2x8x128xf32>
    %11 = vector.extract_strided_slice %6 {offsets = [0, 256], sizes = [16, 128], strides = [1, 1]} : vector<16x384xf32> to vector<16x128xf32>
    %12 = vector.shape_cast %11 : vector<16x128xf32> to vector<2x8x128xf32>
    "tpu.trace_start"() <{level = 10 : i32, message = "bqd,bkd->bqk"}> : () -> ()
    %cst_6 = arith.constant dense<0.000000e+00> : vector<2x8x8xf32>
    %13 = tpu.matmul %8, %10, %cst_6 {dimension_numbers = #tpu.dot_dimension_numbers<[2], [2], [1], [1], [0, 0, 0, 1, 1, 1], [0], [0]>} : vector<2x8x128xf32>, vector<2x8x128xf32>, vector<2x8x8xf32> -> vector<2x8x8xf32>
    "tpu.trace_stop"() : () -> ()
    %c0_7 = arith.constant 0 : index
    %c0_8 = arith.constant 0 : index
    %14 = vector.load %arg2[%c0_7, %c0_8] : memref<8x8xf32, #tpu.memory_space<vmem>>, vector<8x8xf32>
    %15 = vector.shape_cast %14 : vector<8x8xf32> to vector<1x8x8xf32>
    %16 = vector.broadcast %15 : vector<1x8x8xf32> to vector<2x8x8xf32>
    %17 = arith.addf %13, %16 : vector<2x8x8xf32>
    %cst_9 = arith.constant dense<0xFF800000> : vector<2x8xf32>
    %18 = vector.multi_reduction <maximumf>, %17, %cst_9 [2] : vector<2x8x8xf32> to vector<2x8xf32>
    %19 = vector.shape_cast %18 : vector<2x8xf32> to vector<2x8x1xf32>
    %20 = vector.broadcast %19 : vector<2x8x1xf32> to vector<2x8x8xf32>
    %21 = arith.subf %17, %20 : vector<2x8x8xf32>
    %22 = math.exp %21 : vector<2x8x8xf32>
    %cst_10 = arith.constant dense<0.000000e+00> : vector<2x8xf32>
    %23 = vector.multi_reduction <add>, %22, %cst_10 [2] : vector<2x8x8xf32> to vector<2x8xf32>
    %24 = vector.shape_cast %23 : vector<2x8xf32> to vector<2x8x1xf32>
    %25 = tpu.reciprocal %24 {approx = true} : vector<2x8x1xf32> -> vector<2x8x1xf32>
    %26 = arith.mulf %24, %25 : vector<2x8x1xf32>
    %cst_11 = arith.constant 2.000000e+00 : f32
    %27 = vector.broadcast %cst_11 : f32 to vector<2x8x1xf32>
    %28 = arith.subf %27, %26 : vector<2x8x1xf32>
    %29 = arith.mulf %25, %28 : vector<2x8x1xf32>
    %30 = vector.broadcast %29 : vector<2x8x1xf32> to vector<2x8x8xf32>
    %31 = arith.mulf %22, %30 : vector<2x8x8xf32>
    "tpu.trace_start"() <{level = 10 : i32, message = "bqk,bkd->bqd"}> : () -> ()
    %cst_12 = arith.constant dense<0.000000e+00> : vector<2x8x128xf32>
    %32 = tpu.matmul %31, %12, %cst_12 {dimension_numbers = #tpu.dot_dimension_numbers<[2], [1], [1], [2], [0, 0, 0, 1, 1, 2], [0], [0]>} : vector<2x8x8xf32>, vector<2x8x128xf32>, vector<2x8x128xf32> -> vector<2x8x128xf32>
    "tpu.trace_stop"() : () -> ()
    %33 = vector.shape_cast %32 : vector<2x8x128xf32> to vector<16x128xf32>
    %cst_13 = arith.constant 0.000000e+00 : f32
    %34 = vector.broadcast %cst_13 : f32 to vector<16x128xf32>
    %35 = arith.maximumf %33, %34 : vector<16x128xf32>
    %36 = arith.addf %35, %1 : vector<16x128xf32>
    %c0_14 = arith.constant 0 : index
    %c0_15 = arith.constant 0 : index
    %37 = vector.load %arg5[%c0_14, %c0_15] : memref<128x128xf32, #tpu.memory_space<vmem>>, vector<128x128xf32>
    %cst_16 = arith.constant dense<0.000000e+00> : vector<16x128xf32>
    %38 = tpu.matmul %36, %37, %cst_16 {dimension_numbers = #tpu.dot_dimension_numbers<[1], [0], [0], [1], [0, 0, 1, 1], [], []>} : vector<16x128xf32>, vector<128x128xf32>, vector<16x128xf32> -> vector<16x128xf32>
    %c0_17 = arith.constant 0 : index
    %c0_18 = arith.constant 0 : index
    %39 = vector.load %arg6[%c0_17, %c0_18] : memref<1x128xf32, #tpu.memory_space<vmem>>, vector<1x128xf32>
    %40 = vector.broadcast %39 : vector<1x128xf32> to vector<16x128xf32>
    %41 = arith.addf %38, %40 : vector<16x128xf32>
    %cst_19 = arith.constant 0.000000e+00 : f32
    %42 = vector.broadcast %cst_19 : f32 to vector<16x128xf32>
    %43 = arith.maximumf %41, %42 : vector<16x128xf32>
    %c0_20 = arith.constant 0 : index
    %c0_21 = arith.constant 0 : index
    %44 = vector.load %arg7[%c0_20, %c0_21] : memref<128x128xf32, #tpu.memory_space<vmem>>, vector<128x128xf32>
    %cst_22 = arith.constant dense<0.000000e+00> : vector<16x128xf32>
    %45 = tpu.matmul %43, %44, %cst_22 {dimension_numbers = #tpu.dot_dimension_numbers<[1], [0], [0], [1], [0, 0, 1, 1], [], []>} : vector<16x128xf32>, vector<128x128xf32>, vector<16x128xf32> -> vector<16x128xf32>
    %c0_23 = arith.constant 0 : index
    %c0_24 = arith.constant 0 : index
    %46 = vector.load %arg8[%c0_23, %c0_24] : memref<1x128xf32, #tpu.memory_space<vmem>>, vector<1x128xf32>
    %47 = vector.broadcast %46 : vector<1x128xf32> to vector<16x128xf32>
    %48 = arith.addf %45, %47 : vector<16x128xf32>
    %cst_25 = arith.constant 0.000000e+00 : f32
    %49 = vector.broadcast %cst_25 : f32 to vector<16x128xf32>
    %50 = arith.maximumf %48, %49 : vector<16x128xf32>
    %51 = arith.addf %50, %36 : vector<16x128xf32>
    %c0_26 = arith.constant 0 : index
    %c0_27 = arith.constant 0 : index
    %c0_28 = arith.constant 0 : index
    %52 = vector.load %arg9[%c0_26, %c0_27, %c0_28] : memref<1x16x128xf32, #tpu.memory_space<vmem>>, vector<1x16x128xf32>
    %53 = vector.shape_cast %52 : vector<1x16x128xf32> to vector<16x128xf32>
    %54 = vector.shape_cast %51 : vector<16x128xf32> to vector<1x16x128xf32>
    tpu.vector_store %arg9[%c0_26, %c0_27, %c0_28], %54 {strides = array<i32>} : memref<1x16x128xf32, #tpu.memory_space<vmem>>, vector<1x16x128xf32>,
    return
  }
  func.func @transform_0(%arg0: i32) -> (i32, i32, i32) {
    %c0_i32 = arith.constant 0 : i32
    %c0_i32_0 = arith.constant 0 : i32
    %c0_i32_1 = arith.constant 0 : i32
    return %arg0, %c0_i32, %c0_i32_0 : i32, i32, i32
  }
  func.func @transform_1(%arg0: i32) -> (i32, i32) {
    %c0_i32 = arith.constant 0 : i32
    %c0_i32_0 = arith.constant 0 : i32
    %c0_i32_1 = arith.constant 0 : i32
    return %c0_i32, %c0_i32_0 : i32, i32
  }
  func.func @transform_2(%arg0: i32) -> (i32, i32) {
    %c0_i32 = arith.constant 0 : i32
    %c0_i32_0 = arith.constant 0 : i32
    %c0_i32_1 = arith.constant 0 : i32
    return %c0_i32, %c0_i32_0 : i32, i32
  }
  func.func @transform_3(%arg0: i32) -> (i32, i32) {
    %c0_i32 = arith.constant 0 : i32
    %c0_i32_0 = arith.constant 0 : i32
    %c0_i32_1 = arith.constant 0 : i32
    return %c0_i32, %c0_i32_0 : i32, i32
  }
  func.func @transform_4(%arg0: i32) -> (i32, i32) {
    %c0_i32 = arith.constant 0 : i32
    %c0_i32_0 = arith.constant 0 : i32
    %c0_i32_1 = arith.constant 0 : i32
    return %c0_i32, %c0_i32_0 : i32, i32
  }
  func.func @transform_5(%arg0: i32) -> (i32, i32) {
    %c0_i32 = arith.constant 0 : i32
    %c0_i32_0 = arith.constant 0 : i32
    %c0_i32_1 = arith.constant 0 : i32
    return %c0_i32, %c0_i32_0 : i32, i32
  }
  func.func @transform_6(%arg0: i32) -> (i32, i32) {
    %c0_i32 = arith.constant 0 : i32
    %c0_i32_0 = arith.constant 0 : i32
    %c0_i32_1 = arith.constant 0 : i32
    return %c0_i32, %c0_i32_0 : i32, i32
  }
  func.func @transform_7(%arg0: i32) -> (i32, i32) {
    %c0_i32 = arith.constant 0 : i32
    %c0_i32_0 = arith.constant 0 : i32
    %c0_i32_1 = arith.constant 0 : i32
    return %c0_i32, %c0_i32_0 : i32, i32
  }
  func.func @transform_8(%arg0: i32) -> (i32, i32, i32) {
    %c0_i32 = arith.constant 0 : i32
    %c0_i32_0 = arith.constant 0 : i32
    %c0_i32_1 = arith.constant 0 : i32
    return %arg0, %c0_i32, %c0_i32_0 : i32, i32, i32
  }
}

</mosaic_0001>

<bundles_post_ra>
// kernel: tpu_custom_call.1
= control target key start
LH: loop header
LB: loop body
LE: loop exit
PB: predicated region body
PF: predicated region fallthrough
CT: control target
= control target key end

     0   :  { %13 = vsyncpa [#allocation3], 0  ;;  %s1517_s0 = inlined_call_operand.hbm [shape: f32[1,16,128], index: 0, kind: input, shape index: {}]   ;;  %s1518_s1 = inlined_call_operand.hbm [shape: f32[8,8], index: 1, kind: input, shape index: {}]   ;;  %s1519_s2 = inlined_call_operand.hbm [shape: f32[128,384], index: 2, kind: input, shape index: {}]   ;;  %s1520_s3 = inlined_call_operand.vmem [shape: f32[1,384], index: 3, kind: input, shape index: {}]   ;;  %s1521_s4 = inlined_call_operand.hbm [shape: f32[128,128], index: 4, kind: input, shape index: {}]   ;;  %s1522_s5 = inlined_call_operand.vmem [shape: f32[1,128], index: 5, kind: input, shape index: {}]   ;;  %s1523_s6 = inlined_call_operand.hbm [shape: f32[128,128], index: 6, kind: input, shape index: {}]   ;;  %s1524_s7 = inlined_call_operand.vmem [shape: f32[1,128], index: 7, kind: input, shape index: {}]   ;;  %s1525_s8 = inlined_call_operand.hbm [shape: f32[1,16,128], index: 8, kind: output, shape index: {}]  }
   0x1   :  { %14 = vsyncpa [#allocation6], 0 }
   0x2   :  { %15 = vsyncpa [#allocation9], 0 }
   0x3   :  { %16 = vsyncpa [#allocation4], 0  ;;  %s1337_s27 = smov [#allocation5]   ;;  %s1197_s9 = scalar_lea.hbm %s1518_s1, 128 }
   0x4   :  { %s35_s28 = sshll.u32 %s1337_s27, 4  ;;  %p1198_p0 = scmp.ne.s32.totalorder %s1518_s1, %s1197_s9  ;;  %s36_s28 = int_to_ptr.vmem [resolvable:$true] %s35_s28 }
   0x5   :  { %p1201_p1 = scmp.lt.u32.totalorder %s1197_s9, %s1518_s1 }
   0x7   :  { %p1203_p2 = pnand %p1201_p1, %p1198_p0 }
   0x9   :  { %1206 = shalt.err (!%p1203_p2)
}
   0xa   :  { %s1207_s14 = scalar_lea.vmem %s36_s28, 128  ;;  %p1212_p4 = scmp.lt.s32.totalorder %s36_s28, %s36_s28 }
   0xb   :  { %p1208_p3 = scmp.ne.s32.totalorder %s36_s28, %s1207_s14  ;;  %p1213_p5 = scmp.lt.s32.totalorder %s1207_s14, %s1207_s14 }
   0xd   :  { %p1214_p6 = por %p1213_p5, %p1212_p4 }
   0xf   :  { %p1215_p7 = pnand %p1214_p6, %p1208_p3 }
  0x11   :  { %1218 = shalt.err (!%p1215_p7)
}
  0x12   :  { %38 = dma.hbm_to_vmem [thread:$0]  %s1518_s1, 128, %s36_s28, [#allocation6]  }
  0x13   :  { %s1338_s17 = smov [#allocation8]   ;;  %s1339_s19 = smov [#allocation2]  }
  0x14   :  { %s58_s18 = sshll.u32 %s1338_s17, 4  ;;  %s22_s20 = sshll.u32 %s1339_s19, 4  ;;  %s59_s18 = int_to_ptr.vmem [resolvable:$true] %s58_s18  ;;  %s23_s20 = int_to_ptr.vmem [resolvable:$true] %s22_s20 }
  0x15   :  { %s1219_s23 = scalar_lea.hbm %s1521_s4, 2048 }
  0x16   :  { %p1220_p8 = scmp.ne.s32.totalorder %s1521_s4, %s1219_s23  ;;  %p1223_p9 = scmp.lt.u32.totalorder %s1219_s23, %s1521_s4 }
  0x18   :  { %p1225_p10 = pnand %p1223_p9, %p1220_p8 }
  0x1a   :  { %1228 = shalt.err (!%p1225_p10)
}
  0x1b   :  { %s1229_s1 = scalar_lea.vmem %s59_s18, 2048  ;;  %p1234_p12 = scmp.lt.s32.totalorder %s59_s18, %s59_s18 }
  0x1c   :  { %p1230_p11 = scmp.ne.s32.totalorder %s59_s18, %s1229_s1  ;;  %p1235_p13 = scmp.lt.s32.totalorder %s1229_s1, %s1229_s1 }
  0x1e   :  { %p1236_p0 = por %p1235_p13, %p1234_p12 }
  0x20   :  { %p1237_p1 = pnand %p1236_p0, %p1230_p11 }
  0x22   :  { %1240 = shalt.err (!%p1237_p1)
}
  0x23   :  { %s1340_s28 = smov 128   ;;  %s1341_s29 = smov 8  }
  0x24   :  { %64 = dma.hbm_to_vmem [thread:$0]  %s1521_s4, 2048, %s59_s18, [#allocation9], %s1340_s28, %s1340_s28, %s1341_s29  }
  0x25   :  { %s1241_s12 = scalar_lea.hbm %s1517_s0, 256 }
  0x26   :  { %p1242_p2 = scmp.ne.s32.totalorder %s1517_s0, %s1241_s12  ;;  %p1245_p3 = scmp.lt.u32.totalorder %s1241_s12, %s1517_s0 }
  0x28   :  { %p1247_p4 = pnand %p1245_p3, %p1242_p2 }
  0x2a   :  { %1250 = shalt.err (!%p1247_p4)
}
  0x2b   :  { %s1251_s17 = scalar_lea.vmem %s23_s20, 256  ;;  %p1256_p6 = scmp.lt.s32.totalorder %s23_s20, %s23_s20 }
  0x2c   :  { %p1252_p5 = scmp.ne.s32.totalorder %s23_s20, %s1251_s17  ;;  %p1257_p7 = scmp.lt.s32.totalorder %s1251_s17, %s1251_s17 }
  0x2e   :  { %p1258_p8 = por %p1257_p7, %p1256_p6 }
  0x30   :  { %p1259_p9 = pnand %p1258_p8, %p1252_p5 }
  0x32   :  { %1262 = shalt.err (!%p1259_p9)
}
  0x33   :  { %28 = dma.hbm_to_vmem [thread:$0]  %s1517_s0, 256, %s23_s20, [#allocation3], %s1340_s28, %s1340_s28, %s1341_s29  }
  0x34   :  { %s1342_s19 = smov [#allocation7]   ;;  %s1263_s24 = scalar_lea.hbm %s1519_s2, 6144 }
  0x35   :  { %s44_s21 = sshll.u32 %s1342_s19, 4  ;;  %p1264_p10 = scmp.ne.s32.totalorder %s1519_s2, %s1263_s24  ;;  %s45_s21 = int_to_ptr.vmem [resolvable:$true] %s44_s21 }
  0x36   :  { %p1267_p11 = scmp.lt.u32.totalorder %s1263_s24, %s1519_s2 }
  0x38   :  { %p1269_p12 = pnand %p1267_p11, %p1264_p10 }
  0x3a   :  { %1272 = shalt.err (!%p1269_p12)
}
  0x3b   :  { %s1273_s30 = scalar_lea.vmem %s45_s21, 6144  ;;  %p1278_p0 = scmp.lt.s32.totalorder %s45_s21, %s45_s21 }
  0x3c   :  { %p1274_p13 = scmp.ne.s32.totalorder %s45_s21, %s1273_s30  ;;  %p1279_p1 = scmp.lt.s32.totalorder %s1273_s30, %s1273_s30 }
  0x3e   :  { %p1280_p2 = por %p1279_p1, %p1278_p0 }
  0x40   :  { %p1281_p3 = pnand %p1280_p2, %p1274_p13 }
  0x42   :  { %1284 = shalt.err (!%p1281_p3)
}
  0x43   :  { %s1343_s0 = smov 384   ;;  %s1344_s20 = smov 24  }
  0x44   :  { %50 = dma.hbm_to_vmem [thread:$0]  %s1519_s2, 6144, %s45_s21, [#allocation6], %s1343_s0, %s1343_s0, %s1344_s20  }
  0x45   :  { %s1345_s11 = smov [#allocation10]   ;;  %s1285_s15 = scalar_lea.hbm %s1523_s6, 2048 }
  0x46   :  { %s72_s12 = sshll.u32 %s1345_s11, 4  ;;  %p1286_p4 = scmp.ne.s32.totalorder %s1523_s6, %s1285_s15  ;;  %s73_s12 = int_to_ptr.vmem [resolvable:$true] %s72_s12 }
  0x47   :  { %p1289_p5 = scmp.lt.u32.totalorder %s1285_s15, %s1523_s6 }
  0x49   :  { %p1291_p6 = pnand %p1289_p5, %p1286_p4 }
  0x4b   :  { %1294 = shalt.err (!%p1291_p6)
}
  0x4c   :  { %s1295_s19 = scalar_lea.vmem %s73_s12, 2048  ;;  %p1300_p8 = scmp.lt.s32.totalorder %s73_s12, %s73_s12 }
  0x4d   :  { %p1296_p7 = scmp.ne.s32.totalorder %s73_s12, %s1295_s19  ;;  %p1301_p9 = scmp.lt.s32.totalorder %s1295_s19, %s1295_s19 }
  0x4f   :  { %p1302_p10 = por %p1301_p9, %p1300_p8 }
  0x51   :  { %p1303_p11 = pnand %p1302_p10, %p1296_p7 }
  0x53   :  { %1306 = shalt.err (!%p1303_p11)
}
  0x54   :  { %78 = dma.hbm_to_vmem [thread:$0]  %s1523_s6, 2048, %s73_s12, [#allocation9], %s1340_s28, %s1340_s28, %s1341_s29  }
  0x55   :  { %1329 = dma.done.wait [#allocation3], 256  }
  0x56   :  { %1330 = vsyncadd [#allocation3], 4294967040 }
  0x57   :  { %1331 = dma.done.wait [#allocation6], 6272  }
  0x58   :  { %1332 = vsyncadd [#allocation6], 4294961024 }
  0x59   :  { %1333 = dma.done.wait [#allocation9], 4096  }
  0x5a   :  { %1334 = vsyncadd [#allocation9], 4294963200  ;;  %v1346_v0 = vmov 0.0   ;;  %v99_v1 = vld [vmem:[#allocation7 + $0x8] sm:$0xff]  ;;  %v102_v2 = vld [vmem:[#allocation7 + $0x20] sm:$0xff]  ;;  %vm1347_vm0 = vmmov 0  }
  0x5b   :  { %227 = vmatprep.mubr.f32.mxu0 %v1346_v0  ;;  %v98_v3 = vld [vmem:[#allocation7] sm:$0xff]  ;;  %v1049_v4 = vpack.c.bf16 %v102_v2, %v99_v1  ;;  %v101_v5 = vld [vmem:[#allocation7 + $0x18] sm:$0xff]  ;;  %v108_v7 = vld [vmem:[#allocation7 + $0x50] sm:$0xff]  ;;  %vm456_vm1 = vcmask 64512   ;;  %s1348_s26 = smov [#allocation11]  }
  0x5c   :  { %v105_v6 = vld [vmem:[#allocation7 + $0x38] sm:$0xff]  ;;  %v1051_v8 = vpack.c.bf16 %v101_v5, %v98_v3  ;;  %v104_v10 = vld [vmem:[#allocation7 + $0x30] sm:$0xff]  ;;  %v107_v11 = vld [vmem:[#allocation7 + $0x48] sm:$0xff]  ;;  %s844_s27 = sshll.u32 %s1348_s26, 4  ;;  %s845_s27 = int_to_ptr.vmem [resolvable:$true] %s844_s27 }
  0x5d   :  { %v1053_v9 = vpack.c.bf16 %v108_v7, %v105_v6  ;;  %v111_v12 = vld [vmem:[#allocation7 + $0x68] sm:$0xff]  ;;  %1050 = vmatprep.subr.bf16.mxu0 %v1049_v4  ;;  %v114_v13 = vld [vmem:[#allocation7 + $0x80] sm:$0xff]  ;;  %v1055_v14 = vpack.c.bf16 %v107_v11, %v104_v10  ;;  %v113_v17 = vld [vmem:[#allocation7 + $0x78] sm:$0xff]  ;;  %p1312_p13 = scmp.lt.s32.totalorder %s845_s27, %s845_s27 }
  0x5e   :  { %1052 = vmatpush1.bf16.msra.mxu0 %v1051_v8  ;;  %v1057_v15 = vpack.c.bf16 %v114_v13, %v111_v12  ;;  %v110_v16 = vld [vmem:[#allocation7 + $0x60] sm:$0xff]  ;;  %v117_v18 = vld [vmem:[#allocation7 + $0x98] sm:$0xff]  ;;  %v120_v19 = vld [vmem:[#allocation7 + $0xb0] sm:$0xff]  ;;  %v148_v12 = vlaneseq }
  0x5f   :  { %1054 = vmatprep.subr.bf16.mxu0 %v1053_v9  ;;  %v1059_v20 = vpack.c.bf16 %v113_v17, %v110_v16  ;;  %v1061_v21 = vpack.c.bf16 %v120_v19, %v117_v18  ;;  %v116_v22 = vld [vmem:[#allocation7 + $0x90] sm:$0xff]  ;;  %v119_v23 = vld [vmem:[#allocation7 + $0xa8] sm:$0xff]  ;;  %v126_v25 = vld [vmem:[#allocation7 + $0xe0] sm:$0xff] }
  0x60   :  { %v123_v24 = vld [vmem:[#allocation7 + $0xc8] sm:$0xff]  ;;  %v100_v27 = vld [vmem:[#allocation7 + $0x10] sm:$0xff]  ;;  %v1063_v29 = vpack.c.bf16 %v119_v23, %v116_v22  ;;  %v122_v30 = vld [vmem:[#allocation7 + $0xc0] sm:$0xff]  ;;  %v149_v13 = vshrl.u32 %v148_v12, 7 }
  0x61   :  { %v1464_v26 = vld [vmem:[#allocation2] sm:$0xff]  ;;  %v106_v32 = vld [vmem:[#allocation7 + $0x40] sm:$0xff]  ;;  %v109_v33 = vld [vmem:[#allocation7 + $0x58] sm:$0xff]  ;;  %v1065_v34 = vpack.c.bf16 %v126_v25, %v123_v24 }
  0x62   :  { %1056 = vmatpush1.bf16.msra.mxu0 %v1055_v14  ;;  %v103_v28 = vld [vmem:[#allocation7 + $0x28] sm:$0xff]  ;;  %956 = vmatprep.mubr.f32.mxu1 %v1464_v26  ;;  %v125_v35 = vld [vmem:[#allocation7 + $0xd8] sm:$0xff]  ;;  %v1085_v36 = vpack.c.bf16 %v109_v33, %v106_v32  ;;  %v112_v37 = vld [vmem:[#allocation7 + $0x70] sm:$0xff]  ;;  %v154_v14 = vsub.s32 1, %v149_v13  ;;  %v150_v16 = vsub.s32 0, %v149_v13  ;;  %v158_v23 = vsub.s32 2, %v149_v13 }
  0x63   :  { %1058 = vmatprep.subr.bf16.mxu0 %v1057_v15  ;;  %v1081_v31 = vpack.c.bf16 %v103_v28, %v100_v27  ;;  %v115_v38 = vld [vmem:[#allocation7 + $0x88] sm:$0xff]  ;;  %v129_v39 = vld [vmem:[#allocation7 + $0xf8] sm:$0xff]  ;;  %v132_v40 = vld [vmem:[#allocation7 + $0x110] sm:$0xff]  ;;  %v1067_v41 = vpack.c.bf16 %v125_v35, %v122_v30 }
  0x64   :  { %v128_v42 = vld [vmem:[#allocation7 + $0xf0] sm:$0xff]  ;;  %v1089_v43 = vpack.c.bf16 %v115_v38, %v112_v37  ;;  %v1069_v44 = vpack.c.bf16 %v132_v40, %v129_v39  ;;  %v131_v45 = vld [vmem:[#allocation7 + $0x108] sm:$0xff]  ;;  %v118_v46 = vld [vmem:[#allocation7 + $0xa0] sm:$0xff] }
  0x65   :  { %1082 = vmatprep.subr.bf16.mxu1 %v1081_v31  ;;  %v121_v47 = vld [vmem:[#allocation7 + $0xb8] sm:$0xff]  ;;  %v135_v48 = vld [vmem:[#allocation7 + $0x128] sm:$0xff]  ;;  %v138_v49 = vld [vmem:[#allocation7 + $0x140] sm:$0xff]  ;;  %v1071_v50 = vpack.c.bf16 %v131_v45, %v128_v42 }
  0x66   :  { %1060 = vmatpush1.bf16.msra.mxu0 %v1059_v20  ;;  %1084 = vmatpush3.bf16.msra.mxu1 %v1081_v31  ;;  %v134_v51 = vld [vmem:[#allocation7 + $0x120] sm:$0xff]  ;;  %v1093_v52 = vpack.c.bf16 %v121_v47, %v118_v46  ;;  %v1073_v53 = vpack.c.bf16 %v138_v49, %v135_v48  ;;  %v137_v54 = vld [vmem:[#allocation7 + $0x138] sm:$0xff]  ;;  %v124_v55 = vld [vmem:[#allocation7 + $0xd0] sm:$0xff] }
  0x67   :  { %1062 = vmatprep.subr.bf16.mxu0 %v1061_v21  ;;  %1086 = vmatprep.subr.bf16.mxu1 %v1085_v36  ;;  %v127_v56 = vld [vmem:[#allocation7 + $0xe8] sm:$0xff]  ;;  %v141_v57 = vld [vmem:[#allocation7 + $0x158] sm:$0xff]  ;;  %v144_v58 = vld [vmem:[#allocation7 + $0x170] sm:$0xff]  ;;  %v1075_v59 = vpack.c.bf16 %v137_v54, %v134_v51 }
  0x68   :  { %v140_v60 = vld [vmem:[#allocation7 + $0x150] sm:$0xff]  ;;  %v1097_v61 = vpack.c.bf16 %v127_v56, %v124_v55  ;;  %v1077_v62 = vpack.c.bf16 %v144_v58, %v141_v57  ;;  %v143_v63 = vld [vmem:[#allocation7 + $0x168] sm:$0xff]  ;;  %v130_v1 = vld [vmem:[#allocation7 + $0x100] sm:$0xff] }
  0x69   :  { %v133_v2 = vld [vmem:[#allocation7 + $0x118] sm:$0xff]  ;;  %v1079_v3 = vpack.c.bf16 %v143_v63, %v140_v60  ;;  %v136_v5 = vld [vmem:[#allocation7 + $0x130] sm:$0xff]  ;;  %v139_v6 = vld [vmem:[#allocation7 + $0x148] sm:$0xff] }
  0x6a   :  { %1064 = vmatpush1.bf16.msra.mxu0 %v1063_v29  ;;  %1088 = vmatpush3.bf16.msra.mxu1 %v1085_v36  ;;  %v1101_v4 = vpack.c.bf16 %v133_v2, %v130_v1  ;;  %v1105_v7 = vpack.c.bf16 %v139_v6, %v136_v5  ;;  %v142_v8 = vld [vmem:[#allocation7 + $0x160] sm:$0xff]  ;;  %v145_v9 = vld [vmem:[#allocation7 + $0x178] sm:$0xff]  ;;  %v1470_v10 = vld [vmem:[#allocation2 + $0x8] sm:$0xff] }
  0x6b   :  { %1066 = vmatprep.subr.bf16.mxu0 %v1065_v34  ;;  %1090 = vmatprep.subr.bf16.mxu1 %v1089_v43  ;;  %v1109_v11 = vpack.c.bf16 %v145_v9, %v142_v8  ;;  %v146_v15 = vld [vmem:[%s1520_s3] sm:$0x7]  ;;  %v315_v34 = vld [vmem:[#allocation5] sm:$0xff]  ;;  %v639_v5 = vld [vmem:[#allocation8 + $0x20] sm:$0xff] }
  0x6c   :  { %v155_v17 = vrot.slane %v146_v15, %v154_v14  ;;  %v151_v19 = vrot.slane %v146_v15, %v150_v16  ;;  %v159_v28 = vrot.slane %v146_v15, %v158_v23  ;;  %v640_v6 = vld [vmem:[#allocation8 + $0x28] sm:$0xff]  ;;  %v642_v12 = vld [vmem:[#allocation8 + $0x38] sm:$0xff]  ;;  %v643_v14 = vld [vmem:[#allocation8 + $0x40] sm:$0xff] }
  0x6d   :  { %v1121_v9 = vpack.c.bf16 %v640_v6, %v639_v5  ;;  %v644_v15 = vld [vmem:[#allocation8 + $0x48] sm:$0xff]  ;;  %v649_v23 = vld [vmem:[#allocation8 + $0x70] sm:$0xff] }
  0x6e   :  { %1068 = vmatpush1.bf16.msra.mxu0 %v1067_v41  ;;  %1092 = vmatpush3.bf16.msra.mxu1 %v1089_v43  ;;  %v1129_v16 = vpack.c.bf16 %v644_v15, %v643_v14 }
  0x6f   :  { %1070 = vmatprep.subr.bf16.mxu0 %v1069_v44  ;;  %1094 = vmatprep.subr.bf16.mxu1 %v1093_v52 }
  0x72   :  { %1072 = vmatpush1.bf16.msra.mxu0 %v1071_v50  ;;  %1096 = vmatpush3.bf16.msra.mxu1 %v1093_v52  ;;  %v635_v52 = vld [vmem:[#allocation8] sm:$0xff] }
  0x73   :  { %1074 = vmatprep.subr.bf16.mxu0 %v1073_v53  ;;  %1098 = vmatprep.subr.bf16.mxu1 %v1097_v61  ;;  %v636_v53 = vld [vmem:[#allocation8 + $0x8] sm:$0xff] }
  0x74   :  { %v1113_v54 = vpack.c.bf16 %v636_v53, %v635_v52 }
  0x76   :  { %1076 = vmatpush1.bf16.msra.mxu0 %v1075_v59  ;;  %1100 = vmatpush3.bf16.msra.mxu1 %v1097_v61  ;;  %v637_v61 = vld [vmem:[#allocation8 + $0x10] sm:$0xff] }
  0x77   :  { %1078 = vmatprep.subr.bf16.mxu0 %v1077_v62  ;;  %1102 = vmatprep.subr.bf16.mxu1 %v1101_v4  ;;  %v638_v62 = vld [vmem:[#allocation8 + $0x18] sm:$0xff] }
  0x7a   :  { %1080 = vmatpush1.bf16.msra.mxu0 %v1079_v3  ;;  %1104 = vmatpush3.bf16.msra.mxu1 %v1101_v4  ;;  %v1117_v4 = vpack.c.bf16 %v638_v62, %v637_v61 }
  0x7b   :  { %964 = vmatprep.subr.mxu0 %v1346_v0  ;;  %1106 = vmatprep.subr.bf16.mxu1 %v1105_v7 }
  0x7d   :  { %228 = vmatmul.mubr.f32.vlgmr.msra.gmra.mrb[0].mxu0 %v1464_v26 }
  0x7e   :  { %233 = vmatprep.mubr.f32.mxu0 %v1346_v0  ;;  %1108 = vmatpush3.bf16.msra.mxu1 %v1105_v7 }
  0x7f   :  { %1110 = vmatprep.subr.bf16.mxu1 %v1109_v11 }
  0x81   :  { %234 = vmatmul.mubr.f32.gmra.mrb[2].mxu0 %v1470_v10 }
  0x82   :  { %1112 = vmatpush3.bf16.msra.mxu1 %v1109_v11  ;;  %966 = vmatprep.mubr.msk.f32.mxu0 %vm1347_vm0, %v1346_v0  ;;  %v641_v11 = vld [vmem:[#allocation8 + $0x30] sm:$0xff] }
  0x83   :  { %959 = vmatprep.subr.mxu1 %v1346_v0  ;;  %v1125_v13 = vpack.c.bf16 %v642_v12, %v641_v11 }
  0x85   :  { %957 = vmatmul.mubr.f32.vlgmr.msra.gmra.mrb[0].mxu1 %v1470_v10 }
  0x86   :  { %961 = vmatprep.mubr.msk.f32.mxu1 %vm1347_vm0, %v1346_v0 }
 0x150   :  { %v229_v18 = vpop.f32.mrb[0].mxu0 }
 0x151   :  { %v231_v20 = vpop.f32.mrb[1].mxu0  ;;  %v230_v24 = vadd.f32 %v229_v18, %v151_v19  ;;  %v646_v18 = vld [vmem:[#allocation8 + $0x58] sm:$0xff] }
 0x152   :  { %v232_v21 = vadd.f32 %v231_v20, %v155_v17  ;;  %v647_v20 = vld [vmem:[#allocation8 + $0x60] sm:$0xff] }
 0x154   :  { %v235_v22 = vpop.f32.mrb[2].mxu0  ;;  %960 = vmatpush3.xpose.msra.mxu1 %v232_v21  ;;  %v648_v21 = vld [vmem:[#allocation8 + $0x68] sm:$0xff] }
 0x155   :  { %v237_v25 = vpop.f32.mrb[3].mxu0  ;;  %969 = vmatprep.subr.mxu1 %v1346_v0  ;;  %v236_v29 = vadd.f32 %v235_v22, %v151_v19  ;;  %v1137_v22 = vpack.c.bf16 %v648_v21, %v647_v20 }
 0x156   :  { %v238_v27 = vadd.f32 %v237_v25, %v155_v17  ;;  %v645_v17 = vld [vmem:[#allocation8 + $0x50] sm:$0xff] }
 0x157   :  { %962 = vmatmul.mubr.f32.vlgmr.msra.gmra.mrb[2].mxu1 %v230_v24  ;;  %v1133_v19 = vpack.c.bf16 %v646_v18, %v645_v17  ;;  %v650_v24 = vld [vmem:[#allocation8 + $0x78] sm:$0xff] }
 0x158   :  { %965 = vmatpush3.xpose.msra.mxu0 %v238_v27  ;;  %971 = vmatprep.mubr.msk.f32.mxu1 %vm1347_vm0, %v1346_v0  ;;  %v958_v30 = vpop.f32.mrb[0].mxu1  ;;  %v1141_v25 = vpack.c.bf16 %v650_v24, %v649_v23  ;;  %v735_v27 = vld [vmem:[#allocation10] sm:$0xff] }
 0x159   :  { %974 = vmatprep.subr.mxu0 %v1346_v0  ;;  %v312_v31 = vadd.f32 %v958_v30, %v159_v28  ;;  %v306_v32 = vpop.f32.mrb[1].mxu1 }
 0x15a   :  { %v307_v33 = vadd.f32 %v306_v32, %v159_v28  ;;  %v736_v28 = vld [vmem:[#allocation10 + $0x8] sm:$0xff] }
 0x15b   :  { %967 = vmatmul.mubr.f32.vlgmr.msra.gmra.mrb[4].mxu0 %v236_v29  ;;  %v737_v29 = vld [vmem:[#allocation10 + $0x10] sm:$0xff]  ;;  %v1145_v30 = vpack.c.bf16 %v736_v28, %v735_v27 }
 0x15c   :  { %976 = vmatprep.mubr.msk.f32.mxu0 %vm1347_vm0, %v1346_v0  ;;  %975 = vmatpush3.msra.mxu0 %v312_v31  ;;  %v738_v31 = vld [vmem:[#allocation10 + $0x18] sm:$0xff] }
 0x15d   :  { %970 = vmatpush3.msra.mxu1 %v307_v33  ;;  %v1149_v32 = vpack.c.bf16 %v738_v31, %v737_v29  ;;  %v739_v33 = vld [vmem:[#allocation10 + $0x20] sm:$0xff]  ;;  %1146 = vmatprep.subr.bf16.mxu0 %v1145_v30 }
 0x15e   :  { %1114 = vmatprep.subr.bf16.mxu1 %v1113_v54 }
 0x22a   :  { %v382_v35 = vpop.f32.mrb[2].mxu1 }
 0x22b   :  { %v383_v36 = vadd.f32 %v382_v35, %v315_v34  ;;  %v963_v37 = vpop.f32.mrb[3].mxu1 }
 0x22c   :  { %v742_v37 = vld [vmem:[#allocation10 + $0x38] sm:$0xff] }
 0x22d   :  { %v457_v38 = vsel %vm456_vm1, %v383_v36, -inf }
 0x22e   :  { %v452_v39 = vpop.f32.mrb[4].mxu0  ;;  %458 = vmax.xlane.f32.xlu0 %v457_v38 }
 0x22f   :  { %v453_v40 = vadd.f32 %v452_v39, %v315_v34  ;;  %v968_v41 = vpop.f32.mrb[5].mxu0  ;;  %v740_v34 = vld [vmem:[#allocation10 + $0x28] sm:$0xff]  ;;  %v743_v39 = vld [vmem:[#allocation10 + $0x40] sm:$0xff] }
 0x230   :  { %v1153_v35 = vpack.c.bf16 %v740_v34, %v739_v33 }
 0x231   :  { %v460_v42 = vsel %vm456_vm1, %v453_v40, -inf }
 0x232   :  { %461 = vmax.xlane.f32.xlu0 %v460_v42  ;;  %v745_v42 = vld [vmem:[#allocation10 + $0x50] sm:$0xff] }
 0x2bb   :  { %v459_v43 = vpop.xlane.xlu0 %458 }
 0x2bc   :  { %v463_v44 = vsub.f32 %v383_v36, %v459_v43  ;;  %v741_v36 = vld [vmem:[#allocation10 + $0x30] sm:$0xff]  ;;  %v746_v43 = vld [vmem:[#allocation10 + $0x58] sm:$0xff] }
 0x2bd   :  { %v1157_v38 = vpack.c.bf16 %v742_v37, %v741_v36 }
 0x2be   :  { %v465_v0 = vmul.f32 1.442695, %v463_v44  ;;  %v1165_v44 = vpack.c.bf16 %v746_v43, %v745_v42 }
 0x2bf   :  { %v462_v45 = vpop.xlane.xlu0 %461 }
 0x2c0   :  { %1189 = vpow2.f32 %v465_v0  ;;  %v464_v46 = vsub.f32 %v453_v40, %v462_v45  ;;  %v744_v40 = vld [vmem:[#allocation10 + $0x48] sm:$0xff]  ;;  %v747_v0 = vld [vmem:[#allocation10 + $0x60] sm:$0xff] }
 0x2c1   :  { %v1161_v41 = vpack.c.bf16 %v744_v40, %v743_v39  ;;  %v748_v45 = vld [vmem:[#allocation10 + $0x68] sm:$0xff] }
 0x2c2   :  { %v467_v47 = vmul.f32 1.442695, %v464_v46  ;;  %v1169_v46 = vpack.c.bf16 %v748_v45, %v747_v0 }
 0x2c4   :  { %1191 = vpow2.f32 %v467_v47 }
 0x2ca   :  { %v1190_v48 = vpop.eup %1189 }
 0x2cb   :  { %v469_v49 = vsel %vm456_vm1, %v1190_v48, 0.0 }
 0x2cc   :  { %470 = vadd.xlane.f32.xlu1 %v469_v49 }
 0x2ce   :  { %v1192_v50 = vpop.eup %1191 }
 0x2cf   :  { %v472_v51 = vsel %vm456_vm1, %v1192_v50, 0.0 }
 0x2d0   :  { %473 = vadd.xlane.f32.xlu1 %v472_v51 }
 0x359   :  { %v471_v55 = vpop.xlane.xlu1 %470 }
 0x35a   :  { %1193 = vrcp.f32 %v471_v55 }
 0x35d   :  { %v474_v56 = vpop.xlane.xlu1 %473 }
 0x35e   :  { %1195 = vrcp.f32 %v474_v56 }
 0x364   :  { %v1194_v57 = vpop.eup %1193 }
 0x365   :  { %v477_v58 = vmul.f32 %v1194_v57, %v471_v55  ;;  %v749_v55 = vld [vmem:[#allocation10 + $0x70] sm:$0xff] }
 0x367   :  { %v479_v59 = vsub.f32 2.0, %v477_v58  ;;  %v860_v58 = vld [vmem:[%s1522_s5] ss:$0 sm:$0xff]  ;;  %s1307_s5 = scalar_lea.vmem %s845_s27, 256 }
 0x368   :  { %v1196_v60 = vpop.eup %1195  ;;  %p1308_p12 = scmp.ne.s32.totalorder %s845_s27, %s1307_s5  ;;  %p1313_p0 = scmp.lt.s32.totalorder %s1307_s5, %s1307_s5 }
 0x369   :  { %v481_v63 = vmul.f32 %v1194_v57, %v479_v59  ;;  %v478_v1 = vmul.f32 %v1196_v60, %v474_v56  ;;  %v750_v56 = vld [vmem:[#allocation10 + $0x78] sm:$0xff] }
 0x36a   :  { %v1173_v57 = vpack.c.bf16 %v750_v56, %v749_v55  ;;  %p1314_p1 = por %p1313_p0, %p1312_p13 }
 0x36b   :  { %v483_v2 = vmul.f32 %v1190_v48, %v481_v63  ;;  %v480_v3 = vsub.f32 2.0, %v478_v1 }
 0x36c   :  { %p1315_p2 = pnand %p1314_p1, %p1308_p12 }
 0x36d   :  { %v482_v7 = vmul.f32 %v1196_v60, %v480_v3  ;;  %972 = vmatmul.mubr.msk.f32.vlgmr.msra.gmra.mrb[4].mxu1 %vm456_vm1, %v483_v2 }
 0x36e   :  { %1116 = vmatpush3.bf16.msra.mxu1 %v1113_v54 }
 0x36f   :  { %v484_v8 = vmul.f32 %v1192_v50, %v482_v7  ;;  %1118 = vmatprep.subr.bf16.mxu1 %v1117_v4 }
 0x371   :  { %977 = vmatmul.mubr.msk.f32.vlgmr.msra.gmra.mrb[6].mxu0 %vm456_vm1, %v484_v8 }
 0x372   :  { %1120 = vmatpush3.bf16.msra.mxu1 %v1117_v4  ;;  %1148 = vmatpush3.bf16.msra.mxu0 %v1145_v30 }
 0x373   :  { %1122 = vmatprep.subr.bf16.mxu1 %v1121_v9  ;;  %1150 = vmatprep.subr.bf16.mxu0 %v1149_v32 }
 0x376   :  { %1124 = vmatpush3.bf16.msra.mxu1 %v1121_v9  ;;  %1152 = vmatpush3.bf16.msra.mxu0 %v1149_v32 }
 0x377   :  { %1126 = vmatprep.subr.bf16.mxu1 %v1125_v13  ;;  %1154 = vmatprep.subr.bf16.mxu0 %v1153_v35 }
 0x37a   :  { %1128 = vmatpush3.bf16.msra.mxu1 %v1125_v13  ;;  %1156 = vmatpush3.bf16.msra.mxu0 %v1153_v35 }
 0x37b   :  { %1130 = vmatprep.subr.bf16.mxu1 %v1129_v16  ;;  %1158 = vmatprep.subr.bf16.mxu0 %v1157_v38 }
 0x37e   :  { %1132 = vmatpush3.bf16.msra.mxu1 %v1129_v16  ;;  %1160 = vmatpush3.bf16.msra.mxu0 %v1157_v38 }
 0x37f   :  { %1134 = vmatprep.subr.bf16.mxu1 %v1133_v19  ;;  %1162 = vmatprep.subr.bf16.mxu0 %v1161_v41 }
 0x382   :  { %1136 = vmatpush3.bf16.msra.mxu1 %v1133_v19  ;;  %1164 = vmatpush3.bf16.msra.mxu0 %v1161_v41 }
 0x383   :  { %1138 = vmatprep.subr.bf16.mxu1 %v1137_v22  ;;  %1166 = vmatprep.subr.bf16.mxu0 %v1165_v44 }
 0x386   :  { %1140 = vmatpush3.bf16.msra.mxu1 %v1137_v22  ;;  %1168 = vmatpush3.bf16.msra.mxu0 %v1165_v44 }
 0x387   :  { %1142 = vmatprep.subr.bf16.mxu1 %v1141_v25  ;;  %1170 = vmatprep.subr.bf16.mxu0 %v1169_v46 }
 0x38a   :  { %1144 = vmatpush3.bf16.msra.mxu1 %v1141_v25  ;;  %1172 = vmatpush3.bf16.msra.mxu0 %v1169_v46 }
 0x38b   :  { %1174 = vmatprep.subr.bf16.mxu0 %v1173_v57 }
 0x38e   :  { %1176 = vmatpush3.bf16.msra.mxu0 %v1173_v57 }
 0x440   :  { %v554_v47 = vpop.f32.mrb[4].mxu1 }
 0x441   :  { %v631_v48 = vmax.f32 %v554_v47, 0.0  ;;  %v973_v49 = vpop.f32.mrb[5].mxu1 }
 0x443   :  { %v633_v50 = vadd.f32 %v631_v48, %v1464_v26 }
 0x444   :  { %v627_v51 = vpop.f32.mrb[6].mxu0 }
 0x445   :  { %v632_v52 = vmax.f32 %v627_v51, 0.0  ;;  %v978_v53 = vpop.f32.mrb[7].mxu0  ;;  %1011 = vmatprep.mubr.f32.mxu1 %v633_v50 }
 0x447   :  { %v634_v54 = vadd.f32 %v632_v52, %v1470_v10  ;;  %v861_v10 = vld [vmem:[%s1524_s7] ss:$0 sm:$0xff] }
 0x449   :  { %1012 = vmatmul.mubr.f32.vlgmr.msra.gmra.mrb[6].mxu1 %v634_v54 }
 0x51c   :  { %v1013_v59 = vpop.f32.mrb[6].mxu1 }
 0x51d   :  { %v730_v60 = vadd.f32 %v1013_v59, %v860_v58  ;;  %v724_v61 = vpop.f32.mrb[7].mxu1 }
 0x51e   :  { %v725_v26 = vadd.f32 %v860_v58, %v724_v61 }
 0x51f   :  { %v734_v63 = vmax.f32 %v730_v60, 0.0 }
 0x520   :  { %v733_v62 = vmax.f32 %v725_v26, 0.0 }
 0x522   :  { %1046 = vmatprep.mubr.f32.mxu0 %v733_v62 }
 0x523   :  { %1047 = vmatmul.mubr.f32.vlgmr.msra.gmra.mrb[8].mxu0 %v734_v63 }
 0x5f6   :  { %v1048_v1 = vpop.f32.mrb[8].mxu0 }
 0x5f7   :  { %v830_v2 = vadd.f32 %v1048_v1, %v861_v10  ;;  %v824_v3 = vpop.f32.mrb[9].mxu0 }
 0x5f8   :  { %v825_v4 = vadd.f32 %v861_v10, %v824_v3 }
 0x5f9   :  { %v834_v5 = vmax.f32 %v830_v2, 0.0 }
 0x5fa   :  { %v833_v6 = vmax.f32 %v825_v4, 0.0 }
 0x5fb   :  { %v836_v7 = vadd.f32 %v834_v5, %v634_v54 }
 0x5fc   :  { %v835_v8 = vadd.f32 %v833_v6, %v633_v50 }
 0x5fd   :  { %838 = vst [vmem:[#allocation11 + $0x8] sm:$0xff] %v836_v7 }
 0x5fe   :  { %837 = vst [vmem:[#allocation11] sm:$0xff] %v835_v8 }
 0x5ff   :  { %1318 = shalt.err (!%p1315_p2)
}
 0x600   :  { %s1319_s30 = scalar_lea.hbm %s1525_s8, 256 }
 0x601   :  { %p1320_p3 = scmp.ne.s32.totalorder %s1525_s8, %s1319_s30  ;;  %p1323_p4 = scmp.lt.u32.totalorder %s1319_s30, %s1525_s8 }
 0x603   :  { %p1325_p5 = pnand %p1323_p4, %p1320_p3 }
 0x605   :  { %1328 = shalt.err (!%p1325_p5)
}
 0x606   :  { %850 = dma.vmem_to_hbm [thread:$0]  %s845_s27, 256, %s1525_s8, [#allocation4], %s1340_s28, %s1340_s28, %s1341_s29  }
 0x607   :  { %1335 = dma.done.wait [#allocation4], 256  }
 0x608   :  { %1336 = vsyncadd [#allocation4], 4294967040 }
 0x609   :  { %854 = vsyncpa [#allocation3], 1 }
 0x60a   :  { %855 = vsyncpa [#allocation6], 1 }
 0x60b   :  { %856 = vsyncpa [#allocation9], 1 }
 0x60c   :  { %857 = vsyncpa [#allocation4], 1 }

// kernel: tpu_custom_call.1
= control target key start
LH: loop header
LB: loop body
LE: loop exit
PB: predicated region body
PF: predicated region fallthrough
CT: control target
= control target key end

     0   :  { %13 = vsyncpa [#allocation3], 0  ;;  %s1517_s0 = inlined_call_operand.hbm [shape: f32[1,16,128], index: 0, kind: input, shape index: {}]   ;;  %s1518_s1 = inlined_call_operand.hbm [shape: f32[8,8], index: 1, kind: input, shape index: {}]   ;;  %s1519_s2 = inlined_call_operand.hbm [shape: f32[128,384], index: 2, kind: input, shape index: {}]   ;;  %s1520_s3 = inlined_call_operand.vmem [shape: f32[1,384], index: 3, kind: input, shape index: {}]   ;;  %s1521_s4 = inlined_call_operand.hbm [shape: f32[128,128], index: 4, kind: input, shape index: {}]   ;;  %s1522_s5 = inlined_call_operand.vmem [shape: f32[1,128], index: 5, kind: input, shape index: {}]   ;;  %s1523_s6 = inlined_call_operand.hbm [shape: f32[128,128], index: 6, kind: input, shape index: {}]   ;;  %s1524_s7 = inlined_call_operand.vmem [shape: f32[1,128], index: 7, kind: input, shape index: {}]   ;;  %s1525_s8 = inlined_call_operand.hbm [shape: f32[1,16,128], index: 8, kind: output, shape index: {}]  }
   0x1   :  { %14 = vsyncpa [#allocation6], 0 }
   0x2   :  { %15 = vsyncpa [#allocation9], 0 }
   0x3   :  { %16 = vsyncpa [#allocation4], 0  ;;  %s1337_s27 = smov [#allocation5]   ;;  %s1197_s9 = scalar_lea.hbm %s1518_s1, 128 }
   0x4   :  { %s35_s28 = sshll.u32 %s1337_s27, 4  ;;  %p1198_p0 = scmp.ne.s32.totalorder %s1518_s1, %s1197_s9  ;;  %s36_s28 = int_to_ptr.vmem [resolvable:$true] %s35_s28 }
   0x5   :  { %p1201_p1 = scmp.lt.u32.totalorder %s1197_s9, %s1518_s1 }
   0x7   :  { %p1203_p2 = pnand %p1201_p1, %p1198_p0 }
   0x9   :  { %1206 = shalt.err (!%p1203_p2)
}
   0xa   :  { %s1207_s14 = scalar_lea.vmem %s36_s28, 128  ;;  %p1212_p4 = scmp.lt.s32.totalorder %s36_s28, %s36_s28 }
   0xb   :  { %p1208_p3 = scmp.ne.s32.totalorder %s36_s28, %s1207_s14  ;;  %p1213_p5 = scmp.lt.s32.totalorder %s1207_s14, %s1207_s14 }
   0xd   :  { %p1214_p6 = por %p1213_p5, %p1212_p4 }
   0xf   :  { %p1215_p7 = pnand %p1214_p6, %p1208_p3 }
  0x11   :  { %1218 = shalt.err (!%p1215_p7)
}
  0x12   :  { %38 = dma.hbm_to_vmem [thread:$0]  %s1518_s1, 128, %s36_s28, [#allocation6]  }
  0x13   :  { %s1338_s17 = smov [#allocation8]   ;;  %s1339_s19 = smov [#allocation2]  }
  0x14   :  { %s58_s18 = sshll.u32 %s1338_s17, 4  ;;  %s22_s20 = sshll.u32 %s1339_s19, 4  ;;  %s59_s18 = int_to_ptr.vmem [resolvable:$true] %s58_s18  ;;  %s23_s20 = int_to_ptr.vmem [resolvable:$true] %s22_s20 }
  0x15   :  { %s1219_s23 = scalar_lea.hbm %s1521_s4, 2048 }
  0x16   :  { %p1220_p8 = scmp.ne.s32.totalorder %s1521_s4, %s1219_s23  ;;  %p1223_p9 = scmp.lt.u32.totalorder %s1219_s23, %s1521_s4 }
  0x18   :  { %p1225_p10 = pnand %p1223_p9, %p1220_p8 }
  0x1a   :  { %1228 = shalt.err (!%p1225_p10)
}
  0x1b   :  { %s1229_s1 = scalar_lea.vmem %s59_s18, 2048  ;;  %p1234_p12 = scmp.lt.s32.totalorder %s59_s18, %s59_s18 }
  0x1c   :  { %p1230_p11 = scmp.ne.s32.totalorder %s59_s18, %s1229_s1  ;;  %p1235_p13 = scmp.lt.s32.totalorder %s1229_s1, %s1229_s1 }
  0x1e   :  { %p1236_p0 = por %p1235_p13, %p1234_p12 }
  0x20   :  { %p1237_p1 = pnand %p1236_p0, %p1230_p11 }
  0x22   :  { %1240 = shalt.err (!%p1237_p1)
}
  0x23   :  { %s1340_s28 = smov 128   ;;  %s1341_s29 = smov 8  }
  0x24   :  { %64 = dma.hbm_to_vmem [thread:$0]  %s1521_s4, 2048, %s59_s18, [#allocation9], %s1340_s28, %s1340_s28, %s1341_s29  }
  0x25   :  { %s1241_s12 = scalar_lea.hbm %s1517_s0, 256 }
  0x26   :  { %p1242_p2 = scmp.ne.s32.totalorder %s1517_s0, %s1241_s12  ;;  %p1245_p3 = scmp.lt.u32.totalorder %s1241_s12, %s1517_s0 }
  0x28   :  { %p1247_p4 = pnand %p1245_p3, %p1242_p2 }
  0x2a   :  { %1250 = shalt.err (!%p1247_p4)
}
  0x2b   :  { %s1251_s17 = scalar_lea.vmem %s23_s20, 256  ;;  %p1256_p6 = scmp.lt.s32.totalorder %s23_s20, %s23_s20 }
  0x2c   :  { %p1252_p5 = scmp.ne.s32.totalorder %s23_s20, %s1251_s17  ;;  %p1257_p7 = scmp.lt.s32.totalorder %s1251_s17, %s1251_s17 }
  0x2e   :  { %p1258_p8 = por %p1257_p7, %p1256_p6 }
  0x30   :  { %p1259_p9 = pnand %p1258_p8, %p1252_p5 }
  0x32   :  { %1262 = shalt.err (!%p1259_p9)
}
  0x33   :  { %28 = dma.hbm_to_vmem [thread:$0]  %s1517_s0, 256, %s23_s20, [#allocation3], %s1340_s28, %s1340_s28, %s1341_s29  }
  0x34   :  { %s1342_s19 = smov [#allocation7]   ;;  %s1263_s24 = scalar_lea.hbm %s1519_s2, 6144 }
  0x35   :  { %s44_s21 = sshll.u32 %s1342_s19, 4  ;;  %p1264_p10 = scmp.ne.s32.totalorder %s1519_s2, %s1263_s24  ;;  %s45_s21 = int_to_ptr.vmem [resolvable:$true] %s44_s21 }
  0x36   :  { %p1267_p11 = scmp.lt.u32.totalorder %s1263_s24, %s1519_s2 }
  0x38   :  { %p1269_p12 = pnand %p1267_p11, %p1264_p10 }
  0x3a   :  { %1272 = shalt.err (!%p1269_p12)
}
  0x3b   :  { %s1273_s30 = scalar_lea.vmem %s45_s21, 6144  ;;  %p1278_p0 = scmp.lt.s32.totalorder %s45_s21, %s45_s21 }
  0x3c   :  { %p1274_p13 = scmp.ne.s32.totalorder %s45_s21, %s1273_s30  ;;  %p1279_p1 = scmp.lt.s32.totalorder %s1273_s30, %s1273_s30 }
  0x3e   :  { %p1280_p2 = por %p1279_p1, %p1278_p0 }
  0x40   :  { %p1281_p3 = pnand %p1280_p2, %p1274_p13 }
  0x42   :  { %1284 = shalt.err (!%p1281_p3)
}
  0x43   :  { %s1343_s0 = smov 384   ;;  %s1344_s20 = smov 24  }
  0x44   :  { %50 = dma.hbm_to_vmem [thread:$0]  %s1519_s2, 6144, %s45_s21, [#allocation6], %s1343_s0, %s1343_s0, %s1344_s20  }
  0x45   :  { %s1345_s11 = smov [#allocation10]   ;;  %s1285_s15 = scalar_lea.hbm %s1523_s6, 2048 }
  0x46   :  { %s72_s12 = sshll.u32 %s1345_s11, 4  ;;  %p1286_p4 = scmp.ne.s32.totalorder %s1523_s6, %s1285_s15  ;;  %s73_s12 = int_to_ptr.vmem [resolvable:$true] %s72_s12 }
  0x47   :  { %p1289_p5 = scmp.lt.u32.totalorder %s1285_s15, %s1523_s6 }
  0x49   :  { %p1291_p6 = pnand %p1289_p5, %p1286_p4 }
  0x4b   :  { %1294 = shalt.err (!%p1291_p6)
}
  0x4c   :  { %s1295_s19 = scalar_lea.vmem %s73_s12, 2048  ;;  %p1300_p8 = scmp.lt.s32.totalorder %s73_s12, %s73_s12 }
  0x4d   :  { %p1296_p7 = scmp.ne.s32.totalorder %s73_s12, %s1295_s19  ;;  %p1301_p9 = scmp.lt.s32.totalorder %s1295_s19, %s1295_s19 }
  0x4f   :  { %p1302_p10 = por %p1301_p9, %p1300_p8 }
  0x51   :  { %p1303_p11 = pnand %p1302_p10, %p1296_p7 }
  0x53   :  { %1306 = shalt.err (!%p1303_p11)
}
  0x54   :  { %78 = dma.hbm_to_vmem [thread:$0]  %s1523_s6, 2048, %s73_s12, [#allocation9], %s1340_s28, %s1340_s28, %s1341_s29  }
  0x55   :  { %1329 = dma.done.wait [#allocation3], 256  }
  0x56   :  { %1330 = vsyncadd [#allocation3], 4294967040 }
  0x57   :  { %1331 = dma.done.wait [#allocation6], 6272  }
  0x58   :  { %1332 = vsyncadd [#allocation6], 4294961024 }
  0x59   :  { %1333 = dma.done.wait [#allocation9], 4096  }
  0x5a   :  { %1334 = vsyncadd [#allocation9], 4294963200  ;;  %v1346_v0 = vmov 0.0   ;;  %v99_v1 = vld [vmem:[#allocation7 + $0x8] sm:$0xff]  ;;  %v102_v2 = vld [vmem:[#allocation7 + $0x20] sm:$0xff]  ;;  %vm1347_vm0 = vmmov 0  }
  0x5b   :  { %227 = vmatprep.mubr.f32.mxu0 %v1346_v0  ;;  %v98_v3 = vld [vmem:[#allocation7] sm:$0xff]  ;;  %v1049_v4 = vpack.c.bf16 %v102_v2, %v99_v1  ;;  %v101_v5 = vld [vmem:[#allocation7 + $0x18] sm:$0xff]  ;;  %v108_v7 = vld [vmem:[#allocation7 + $0x50] sm:$0xff]  ;;  %vm456_vm1 = vcmask 64512   ;;  %s1348_s26 = smov [#allocation11]  }
  0x5c   :  { %v105_v6 = vld [vmem:[#allocation7 + $0x38] sm:$0xff]  ;;  %v1051_v8 = vpack.c.bf16 %v101_v5, %v98_v3  ;;  %v104_v10 = vld [vmem:[#allocation7 + $0x30] sm:$0xff]  ;;  %v107_v11 = vld [vmem:[#allocation7 + $0x48] sm:$0xff]  ;;  %s844_s27 = sshll.u32 %s1348_s26, 4  ;;  %s845_s27 = int_to_ptr.vmem [resolvable:$true] %s844_s27 }
  0x5d   :  { %v1053_v9 = vpack.c.bf16 %v108_v7, %v105_v6  ;;  %v111_v12 = vld [vmem:[#allocation7 + $0x68] sm:$0xff]  ;;  %1050 = vmatprep.subr.bf16.mxu0 %v1049_v4  ;;  %v114_v13 = vld [vmem:[#allocation7 + $0x80] sm:$0xff]  ;;  %v1055_v14 = vpack.c.bf16 %v107_v11, %v104_v10  ;;  %v113_v17 = vld [vmem:[#allocation7 + $0x78] sm:$0xff]  ;;  %p1312_p13 = scmp.lt.s32.totalorder %s845_s27, %s845_s27 }
  0x5e   :  { %1052 = vmatpush1.bf16.msra.mxu0 %v1051_v8  ;;  %v1057_v15 = vpack.c.bf16 %v114_v13, %v111_v12  ;;  %v110_v16 = vld [vmem:[#allocation7 + $0x60] sm:$0xff]  ;;  %v117_v18 = vld [vmem:[#allocation7 + $0x98] sm:$0xff]  ;;  %v120_v19 = vld [vmem:[#allocation7 + $0xb0] sm:$0xff]  ;;  %v148_v12 = vlaneseq }
  0x5f   :  { %1054 = vmatprep.subr.bf16.mxu0 %v1053_v9  ;;  %v1059_v20 = vpack.c.bf16 %v113_v17, %v110_v16  ;;  %v1061_v21 = vpack.c.bf16 %v120_v19, %v117_v18  ;;  %v116_v22 = vld [vmem:[#allocation7 + $0x90] sm:$0xff]  ;;  %v119_v23 = vld [vmem:[#allocation7 + $0xa8] sm:$0xff]  ;;  %v126_v25 = vld [vmem:[#allocation7 + $0xe0] sm:$0xff] }
  0x60   :  { %v123_v24 = vld [vmem:[#allocation7 + $0xc8] sm:$0xff]  ;;  %v100_v27 = vld [vmem:[#allocation7 + $0x10] sm:$0xff]  ;;  %v1063_v29 = vpack.c.bf16 %v119_v23, %v116_v22  ;;  %v122_v30 = vld [vmem:[#allocation7 + $0xc0] sm:$0xff]  ;;  %v149_v13 = vshrl.u32 %v148_v12, 7 }
  0x61   :  { %v1464_v26 = vld [vmem:[#allocation2] sm:$0xff]  ;;  %v106_v32 = vld [vmem:[#allocation7 + $0x40] sm:$0xff]  ;;  %v109_v33 = vld [vmem:[#allocation7 + $0x58] sm:$0xff]  ;;  %v1065_v34 = vpack.c.bf16 %v126_v25, %v123_v24 }
  0x62   :  { %1056 = vmatpush1.bf16.msra.mxu0 %v1055_v14  ;;  %v103_v28 = vld [vmem:[#allocation7 + $0x28] sm:$0xff]  ;;  %956 = vmatprep.mubr.f32.mxu1 %v1464_v26  ;;  %v125_v35 = vld [vmem:[#allocation7 + $0xd8] sm:$0xff]  ;;  %v1085_v36 = vpack.c.bf16 %v109_v33, %v106_v32  ;;  %v112_v37 = vld [vmem:[#allocation7 + $0x70] sm:$0xff]  ;;  %v154_v14 = vsub.s32 1, %v149_v13  ;;  %v150_v16 = vsub.s32 0, %v149_v13  ;;  %v158_v23 = vsub.s32 2, %v149_v13 }
  0x63   :  { %1058 = vmatprep.subr.bf16.mxu0 %v1057_v15  ;;  %v1081_v31 = vpack.c.bf16 %v103_v28, %v100_v27  ;;  %v115_v38 = vld [vmem:[#allocation7 + $0x88] sm:$0xff]  ;;  %v129_v39 = vld [vmem:[#allocation7 + $0xf8] sm:$0xff]  ;;  %v132_v40 = vld [vmem:[#allocation7 + $0x110] sm:$0xff]  ;;  %v1067_v41 = vpack.c.bf16 %v125_v35, %v122_v30 }
  0x64   :  { %v128_v42 = vld [vmem:[#allocation7 + $0xf0] sm:$0xff]  ;;  %v1089_v43 = vpack.c.bf16 %v115_v38, %v112_v37  ;;  %v1069_v44 = vpack.c.bf16 %v132_v40, %v129_v39  ;;  %v131_v45 = vld [vmem:[#allocation7 + $0x108] sm:$0xff]  ;;  %v118_v46 = vld [vmem:[#allocation7 + $0xa0] sm:$0xff] }
  0x65   :  { %1082 = vmatprep.subr.bf16.mxu1 %v1081_v31  ;;  %v121_v47 = vld [vmem:[#allocation7 + $0xb8] sm:$0xff]  ;;  %v135_v48 = vld [vmem:[#allocation7 + $0x128] sm:$0xff]  ;;  %v138_v49 = vld [vmem:[#allocation7 + $0x140] sm:$0xff]  ;;  %v1071_v50 = vpack.c.bf16 %v131_v45, %v128_v42 }
  0x66   :  { %1060 = vmatpush1.bf16.msra.mxu0 %v1059_v20  ;;  %1084 = vmatpush3.bf16.msra.mxu1 %v1081_v31  ;;  %v134_v51 = vld [vmem:[#allocation7 + $0x120] sm:$0xff]  ;;  %v1093_v52 = vpack.c.bf16 %v121_v47, %v118_v46  ;;  %v1073_v53 = vpack.c.bf16 %v138_v49, %v135_v48  ;;  %v137_v54 = vld [vmem:[#allocation7 + $0x138] sm:$0xff]  ;;  %v124_v55 = vld [vmem:[#allocation7 + $0xd0] sm:$0xff] }
  0x67   :  { %1062 = vmatprep.subr.bf16.mxu0 %v1061_v21  ;;  %1086 = vmatprep.subr.bf16.mxu1 %v1085_v36  ;;  %v127_v56 = vld [vmem:[#allocation7 + $0xe8] sm:$0xff]  ;;  %v141_v57 = vld [vmem:[#allocation7 + $0x158] sm:$0xff]  ;;  %v144_v58 = vld [vmem:[#allocation7 + $0x170] sm:$0xff]  ;;  %v1075_v59 = vpack.c.bf16 %v137_v54, %v134_v51 }
  0x68   :  { %v140_v60 = vld [vmem:[#allocation7 + $0x150] sm:$0xff]  ;;  %v1097_v61 = vpack.c.bf16 %v127_v56, %v124_v55  ;;  %v1077_v62 = vpack.c.bf16 %v144_v58, %v141_v57  ;;  %v143_v63 = vld [vmem:[#allocation7 + $0x168] sm:$0xff]  ;;  %v130_v1 = vld [vmem:[#allocation7 + $0x100] sm:$0xff] }
  0x69   :  { %v133_v2 = vld [vmem:[#allocation7 + $0x118] sm:$0xff]  ;;  %v1079_v3 = vpack.c.bf16 %v143_v63, %v140_v60  ;;  %v136_v5 = vld [vmem:[#allocation7 + $0x130] sm:$0xff]  ;;  %v139_v6 = vld [vmem:[#allocation7 + $0x148] sm:$0xff] }
  0x6a   :  { %1064 = vmatpush1.bf16.msra.mxu0 %v1063_v29  ;;  %1088 = vmatpush3.bf16.msra.mxu1 %v1085_v36  ;;  %v1101_v4 = vpack.c.bf16 %v133_v2, %v130_v1  ;;  %v1105_v7 = vpack.c.bf16 %v139_v6, %v136_v5  ;;  %v142_v8 = vld [vmem:[#allocation7 + $0x160] sm:$0xff]  ;;  %v145_v9 = vld [vmem:[#allocation7 + $0x178] sm:$0xff]  ;;  %v1470_v10 = vld [vmem:[#allocation2 + $0x8] sm:$0xff] }
  0x6b   :  { %1066 = vmatprep.subr.bf16.mxu0 %v1065_v34  ;;  %1090 = vmatprep.subr.bf16.mxu1 %v1089_v43  ;;  %v1109_v11 = vpack.c.bf16 %v145_v9, %v142_v8  ;;  %v146_v15 = vld [vmem:[%s1520_s3] sm:$0x7]  ;;  %v315_v34 = vld [vmem:[#allocation5] sm:$0xff]  ;;  %v639_v5 = vld [vmem:[#allocation8 + $0x20] sm:$0xff] }
  0x6c   :  { %v155_v17 = vrot.slane %v146_v15, %v154_v14  ;;  %v151_v19 = vrot.slane %v146_v15, %v150_v16  ;;  %v159_v28 = vrot.slane %v146_v15, %v158_v23  ;;  %v640_v6 = vld [vmem:[#allocation8 + $0x28] sm:$0xff]  ;;  %v642_v12 = vld [vmem:[#allocation8 + $0x38] sm:$0xff]  ;;  %v643_v14 = vld [vmem:[#allocation8 + $0x40] sm:$0xff] }
  0x6d   :  { %v1121_v9 = vpack.c.bf16 %v640_v6, %v639_v5  ;;  %v644_v15 = vld [vmem:[#allocation8 + $0x48] sm:$0xff]  ;;  %v649_v23 = vld [vmem:[#allocation8 + $0x70] sm:$0xff] }
  0x6e   :  { %1068 = vmatpush1.bf16.msra.mxu0 %v1067_v41  ;;  %1092 = vmatpush3.bf16.msra.mxu1 %v1089_v43  ;;  %v1129_v16 = vpack.c.bf16 %v644_v15, %v643_v14 }
  0x6f   :  { %1070 = vmatprep.subr.bf16.mxu0 %v1069_v44  ;;  %1094 = vmatprep.subr.bf16.mxu1 %v1093_v52 }
  0x72   :  { %1072 = vmatpush1.bf16.msra.mxu0 %v1071_v50  ;;  %1096 = vmatpush3.bf16.msra.mxu1 %v1093_v52  ;;  %v635_v52 = vld [vmem:[#allocation8] sm:$0xff] }
  0x73   :  { %1074 = vmatprep.subr.bf16.mxu0 %v1073_v53  ;;  %1098 = vmatprep.subr.bf16.mxu1 %v1097_v61  ;;  %v636_v53 = vld [vmem:[#allocation8 + $0x8] sm:$0xff] }
  0x74   :  { %v1113_v54 = vpack.c.bf16 %v636_v53, %v635_v52 }
  0x76   :  { %1076 = vmatpush1.bf16.msra.mxu0 %v1075_v59  ;;  %1100 = vmatpush3.bf16.msra.mxu1 %v1097_v61  ;;  %v637_v61 = vld [vmem:[#allocation8 + $0x10] sm:$0xff] }
  0x77   :  { %1078 = vmatprep.subr.bf16.mxu0 %v1077_v62  ;;  %1102 = vmatprep.subr.bf16.mxu1 %v1101_v4  ;;  %v638_v62 = vld [vmem:[#allocation8 + $0x18] sm:$0xff] }
  0x7a   :  { %1080 = vmatpush1.bf16.msra.mxu0 %v1079_v3  ;;  %1104 = vmatpush3.bf16.msra.mxu1 %v1101_v4  ;;  %v1117_v4 = vpack.c.bf16 %v638_v62, %v637_v61 }
  0x7b   :  { %964 = vmatprep.subr.mxu0 %v1346_v0  ;;  %1106 = vmatprep.subr.bf16.mxu1 %v1105_v7 }
  0x7d   :  { %228 = vmatmul.mubr.f32.vlgmr.msra.gmra.mrb[0].mxu0 %v1464_v26 }
  0x7e   :  { %233 = vmatprep.mubr.f32.mxu0 %v1346_v0  ;;  %1108 = vmatpush3.bf16.msra.mxu1 %v1105_v7 }
  0x7f   :  { %1110 = vmatprep.subr.bf16.mxu1 %v1109_v11 }
  0x81   :  { %234 = vmatmul.mubr.f32.gmra.mrb[2].mxu0 %v1470_v10 }
  0x82   :  { %1112 = vmatpush3.bf16.msra.mxu1 %v1109_v11  ;;  %966 = vmatprep.mubr.msk.f32.mxu0 %vm1347_vm0, %v1346_v0  ;;  %v641_v11 = vld [vmem:[#allocation8 + $0x30] sm:$0xff] }
  0x83   :  { %959 = vmatprep.subr.mxu1 %v1346_v0  ;;  %v1125_v13 = vpack.c.bf16 %v642_v12, %v641_v11 }
  0x85   :  { %957 = vmatmul.mubr.f32.vlgmr.msra.gmra.mrb[0].mxu1 %v1470_v10 }
  0x86   :  { %961 = vmatprep.mubr.msk.f32.mxu1 %vm1347_vm0, %v1346_v0 }
 0x150   :  { %v229_v18 = vpop.f32.mrb[0].mxu0 }
 0x151   :  { %v231_v20 = vpop.f32.mrb[1].mxu0  ;;  %v230_v24 = vadd.f32 %v229_v18, %v151_v19  ;;  %v646_v18 = vld [vmem:[#allocation8 + $0x58] sm:$0xff] }
 0x152   :  { %v232_v21 = vadd.f32 %v231_v20, %v155_v17  ;;  %v647_v20 = vld [vmem:[#allocation8 + $0x60] sm:$0xff] }
 0x154   :  { %v235_v22 = vpop.f32.mrb[2].mxu0  ;;  %960 = vmatpush3.xpose.msra.mxu1 %v232_v21  ;;  %v648_v21 = vld [vmem:[#allocation8 + $0x68] sm:$0xff] }
 0x155   :  { %v237_v25 = vpop.f32.mrb[3].mxu0  ;;  %969 = vmatprep.subr.mxu1 %v1346_v0  ;;  %v236_v29 = vadd.f32 %v235_v22, %v151_v19  ;;  %v1137_v22 = vpack.c.bf16 %v648_v21, %v647_v20 }
 0x156   :  { %v238_v27 = vadd.f32 %v237_v25, %v155_v17  ;;  %v645_v17 = vld [vmem:[#allocation8 + $0x50] sm:$0xff] }
 0x157   :  { %962 = vmatmul.mubr.f32.vlgmr.msra.gmra.mrb[2].mxu1 %v230_v24  ;;  %v1133_v19 = vpack.c.bf16 %v646_v18, %v645_v17  ;;  %v650_v24 = vld [vmem:[#allocation8 + $0x78] sm:$0xff] }
 0x158   :  { %965 = vmatpush3.xpose.msra.mxu0 %v238_v27  ;;  %971 = vmatprep.mubr.msk.f32.mxu1 %vm1347_vm0, %v1346_v0  ;;  %v958_v30 = vpop.f32.mrb[0].mxu1  ;;  %v1141_v25 = vpack.c.bf16 %v650_v24, %v649_v23  ;;  %v735_v27 = vld [vmem:[#allocation10] sm:$0xff] }
 0x159   :  { %974 = vmatprep.subr.mxu0 %v1346_v0  ;;  %v312_v31 = vadd.f32 %v958_v30, %v159_v28  ;;  %v306_v32 = vpop.f32.mrb[1].mxu1 }
 0x15a   :  { %v307_v33 = vadd.f32 %v306_v32, %v159_v28  ;;  %v736_v28 = vld [vmem:[#allocation10 + $0x8] sm:$0xff] }
 0x15b   :  { %967 = vmatmul.mubr.f32.vlgmr.msra.gmra.mrb[4].mxu0 %v236_v29  ;;  %v737_v29 = vld [vmem:[#allocation10 + $0x10] sm:$0xff]  ;;  %v1145_v30 = vpack.c.bf16 %v736_v28, %v735_v27 }
 0x15c   :  { %976 = vmatprep.mubr.msk.f32.mxu0 %vm1347_vm0, %v1346_v0  ;;  %975 = vmatpush3.msra.mxu0 %v312_v31  ;;  %v738_v31 = vld [vmem:[#allocation10 + $0x18] sm:$0xff] }
 0x15d   :  { %970 = vmatpush3.msra.mxu1 %v307_v33  ;;  %v1149_v32 = vpack.c.bf16 %v738_v31, %v737_v29  ;;  %v739_v33 = vld [vmem:[#allocation10 + $0x20] sm:$0xff]  ;;  %1146 = vmatprep.subr.bf16.mxu0 %v1145_v30 }
 0x15e   :  { %1114 = vmatprep.subr.bf16.mxu1 %v1113_v54 }
 0x22a   :  { %v382_v35 = vpop.f32.mrb[2].mxu1 }
 0x22b   :  { %v383_v36 = vadd.f32 %v382_v35, %v315_v34  ;;  %v963_v37 = vpop.f32.mrb[3].mxu1 }
 0x22c   :  { %v742_v37 = vld [vmem:[#allocation10 + $0x38] sm:$0xff] }
 0x22d   :  { %v457_v38 = vsel %vm456_vm1, %v383_v36, -inf }
 0x22e   :  { %v452_v39 = vpop.f32.mrb[4].mxu0  ;;  %458 = vmax.xlane.f32.xlu0 %v457_v38 }
 0x22f   :  { %v453_v40 = vadd.f32 %v452_v39, %v315_v34  ;;  %v968_v41 = vpop.f32.mrb[5].mxu0  ;;  %v740_v34 = vld [vmem:[#allocation10 + $0x28] sm:$0xff]  ;;  %v743_v39 = vld [vmem:[#allocation10 + $0x40] sm:$0xff] }
 0x230   :  { %v1153_v35 = vpack.c.bf16 %v740_v34, %v739_v33 }
 0x231   :  { %v460_v42 = vsel %vm456_vm1, %v453_v40, -inf }
 0x232   :  { %461 = vmax.xlane.f32.xlu0 %v460_v42  ;;  %v745_v42 = vld [vmem:[#allocation10 + $0x50] sm:$0xff] }
 0x2bb   :  { %v459_v43 = vpop.xlane.xlu0 %458 }
 0x2bc   :  { %v463_v44 = vsub.f32 %v383_v36, %v459_v43  ;;  %v741_v36 = vld [vmem:[#allocation10 + $0x30] sm:$0xff]  ;;  %v746_v43 = vld [vmem:[#allocation10 + $0x58] sm:$0xff] }
 0x2bd   :  { %v1157_v38 = vpack.c.bf16 %v742_v37, %v741_v36 }
 0x2be   :  { %v465_v0 = vmul.f32 1.442695, %v463_v44  ;;  %v1165_v44 = vpack.c.bf16 %v746_v43, %v745_v42 }
 0x2bf   :  { %v462_v45 = vpop.xlane.xlu0 %461 }
 0x2c0   :  { %1189 = vpow2.f32 %v465_v0  ;;  %v464_v46 = vsub.f32 %v453_v40, %v462_v45  ;;  %v744_v40 = vld [vmem:[#allocation10 + $0x48] sm:$0xff]  ;;  %v747_v0 = vld [vmem:[#allocation10 + $0x60] sm:$0xff] }
 0x2c1   :  { %v1161_v41 = vpack.c.bf16 %v744_v40, %v743_v39  ;;  %v748_v45 = vld [vmem:[#allocation10 + $0x68] sm:$0xff] }
 0x2c2   :  { %v467_v47 = vmul.f32 1.442695, %v464_v46  ;;  %v1169_v46 = vpack.c.bf16 %v748_v45, %v747_v0 }
 0x2c4   :  { %1191 = vpow2.f32 %v467_v47 }
 0x2ca   :  { %v1190_v48 = vpop.eup %1189 }
 0x2cb   :  { %v469_v49 = vsel %vm456_vm1, %v1190_v48, 0.0 }
 0x2cc   :  { %470 = vadd.xlane.f32.xlu1 %v469_v49 }
 0x2ce   :  { %v1192_v50 = vpop.eup %1191 }
 0x2cf   :  { %v472_v51 = vsel %vm456_vm1, %v1192_v50, 0.0 }
 0x2d0   :  { %473 = vadd.xlane.f32.xlu1 %v472_v51 }
 0x359   :  { %v471_v55 = vpop.xlane.xlu1 %470 }
 0x35a   :  { %1193 = vrcp.f32 %v471_v55 }
 0x35d   :  { %v474_v56 = vpop.xlane.xlu1 %473 }
 0x35e   :  { %1195 = vrcp.f32 %v474_v56 }
 0x364   :  { %v1194_v57 = vpop.eup %1193 }
 0x365   :  { %v477_v58 = vmul.f32 %v1194_v57, %v471_v55  ;;  %v749_v55 = vld [vmem:[#allocation10 + $0x70] sm:$0xff] }
 0x367   :  { %v479_v59 = vsub.f32 2.0, %v477_v58  ;;  %v860_v58 = vld [vmem:[%s1522_s5] ss:$0 sm:$0xff]  ;;  %s1307_s5 = scalar_lea.vmem %s845_s27, 256 }
 0x368   :  { %v1196_v60 = vpop.eup %1195  ;;  %p1308_p12 = scmp.ne.s32.totalorder %s845_s27, %s1307_s5  ;;  %p1313_p0 = scmp.lt.s32.totalorder %s1307_s5, %s1307_s5 }
 0x369   :  { %v481_v63 = vmul.f32 %v1194_v57, %v479_v59  ;;  %v478_v1 = vmul.f32 %v1196_v60, %v474_v56  ;;  %v750_v56 = vld [vmem:[#allocation10 + $0x78] sm:$0xff] }
 0x36a   :  { %v1173_v57 = vpack.c.bf16 %v750_v56, %v749_v55  ;;  %p1314_p1 = por %p1313_p0, %p1312_p13 }
 0x36b   :  { %v483_v2 = vmul.f32 %v1190_v48, %v481_v63  ;;  %v480_v3 = vsub.f32 2.0, %v478_v1 }
 0x36c   :  { %p1315_p2 = pnand %p1314_p1, %p1308_p12 }
 0x36d   :  { %v482_v7 = vmul.f32 %v1196_v60, %v480_v3  ;;  %972 = vmatmul.mubr.msk.f32.vlgmr.msra.gmra.mrb[4].mxu1 %vm456_vm1, %v483_v2 }
 0x36e   :  { %1116 = vmatpush3.bf16.msra.mxu1 %v1113_v54 }
 0x36f   :  { %v484_v8 = vmul.f32 %v1192_v50, %v482_v7  ;;  %1118 = vmatprep.subr.bf16.mxu1 %v1117_v4 }
 0x371   :  { %977 = vmatmul.mubr.msk.f32.vlgmr.msra.gmra.mrb[6].mxu0 %vm456_vm1, %v484_v8 }
 0x372   :  { %1120 = vmatpush3.bf16.msra.mxu1 %v1117_v4  ;;  %1148 = vmatpush3.bf16.msra.mxu0 %v1145_v30 }
 0x373   :  { %1122 = vmatprep.subr.bf16.mxu1 %v1121_v9  ;;  %1150 = vmatprep.subr.bf16.mxu0 %v1149_v32 }
 0x376   :  { %1124 = vmatpush3.bf16.msra.mxu1 %v1121_v9  ;;  %1152 = vmatpush3.bf16.msra.mxu0 %v1149_v32 }
 0x377   :  { %1126 = vmatprep.subr.bf16.mxu1 %v1125_v13  ;;  %1154 = vmatprep.subr.bf16.mxu0 %v1153_v35 }
 0x37a   :  { %1128 = vmatpush3.bf16.msra.mxu1 %v1125_v13  ;;  %1156 = vmatpush3.bf16.msra.mxu0 %v1153_v35 }
 0x37b   :  { %1130 = vmatprep.subr.bf16.mxu1 %v1129_v16  ;;  %1158 = vmatprep.subr.bf16.mxu0 %v1157_v38 }
 0x37e   :  { %1132 = vmatpush3.bf16.msra.mxu1 %v1129_v16  ;;  %1160 = vmatpush3.bf16.msra.mxu0 %v1157_v38 }
 0x37f   :  { %1134 = vmatprep.subr.bf16.mxu1 %v1133_v19  ;;  %1162 = vmatprep.subr.bf16.mxu0 %v1161_v41 }
 0x382   :  { %1136 = vmatpush3.bf16.msra.mxu1 %v1133_v19  ;;  %1164 = vmatpush3.bf16.msra.mxu0 %v1161_v41 }
 0x383   :  { %1138 = vmatprep.subr.bf16.mxu1 %v1137_v22  ;;  %1166 = vmatprep.subr.bf16.mxu0 %v1165_v44 }
 0x386   :  { %1140 = vmatpush3.bf16.msra.mxu1 %v1137_v22  ;;  %1168 = vmatpush3.bf16.msra.mxu0 %v1165_v44 }
 0x387   :  { %1142 = vmatprep.subr.bf16.mxu1 %v1141_v25  ;;  %1170 = vmatprep.subr.bf16.mxu0 %v1169_v46 }
 0x38a   :  { %1144 = vmatpush3.bf16.msra.mxu1 %v1141_v25  ;;  %1172 = vmatpush3.bf16.msra.mxu0 %v1169_v46 }
 0x38b   :  { %1174 = vmatprep.subr.bf16.mxu0 %v1173_v57 }
 0x38e   :  { %1176 = vmatpush3.bf16.msra.mxu0 %v1173_v57 }
 0x440   :  { %v554_v47 = vpop.f32.mrb[4].mxu1 }
 0x441   :  { %v631_v48 = vmax.f32 %v554_v47, 0.0  ;;  %v973_v49 = vpop.f32.mrb[5].mxu1 }
 0x443   :  { %v633_v50 = vadd.f32 %v631_v48, %v1464_v26 }
 0x444   :  { %v627_v51 = vpop.f32.mrb[6].mxu0 }
 0x445   :  { %v632_v52 = vmax.f32 %v627_v51, 0.0  ;;  %v978_v53 = vpop.f32.mrb[7].mxu0  ;;  %1011 = vmatprep.mubr.f32.mxu1 %v633_v50 }
 0x447   :  { %v634_v54 = vadd.f32 %v632_v52, %v1470_v10  ;;  %v861_v10 = vld [vmem:[%s1524_s7] ss:$0 sm:$0xff] }
 0x449   :  { %1012 = vmatmul.mubr.f32.vlgmr.msra.gmra.mrb[6].mxu1 %v634_v54 }
 0x51c   :  { %v1013_v59 = vpop.f32.mrb[6].mxu1 }
 0x51d   :  { %v730_v60 = vadd.f32 %v1013_v59, %v860_v58  ;;  %v724_v61 = vpop.f32.mrb[7].mxu1 }
 0x51e   :  { %v725_v26 = vadd.f32 %v860_v58, %v724_v61 }
 0x51f   :  { %v734_v63 = vmax.f32 %v730_v60, 0.0 }
 0x520   :  { %v733_v62 = vmax.f32 %v725_v26, 0.0 }
 0x522   :  { %1046 = vmatprep.mubr.f32.mxu0 %v733_v62 }
 0x523   :  { %1047 = vmatmul.mubr.f32.vlgmr.msra.gmra.mrb[8].mxu0 %v734_v63 }
 0x5f6   :  { %v1048_v1 = vpop.f32.mrb[8].mxu0 }
 0x5f7   :  { %v830_v2 = vadd.f32 %v1048_v1, %v861_v10  ;;  %v824_v3 = vpop.f32.mrb[9].mxu0 }
 0x5f8   :  { %v825_v4 = vadd.f32 %v861_v10, %v824_v3 }
 0x5f9   :  { %v834_v5 = vmax.f32 %v830_v2, 0.0 }
 0x5fa   :  { %v833_v6 = vmax.f32 %v825_v4, 0.0 }
 0x5fb   :  { %v836_v7 = vadd.f32 %v834_v5, %v634_v54 }
 0x5fc   :  { %v835_v8 = vadd.f32 %v833_v6, %v633_v50 }
 0x5fd   :  { %838 = vst [vmem:[#allocation11 + $0x8] sm:$0xff] %v836_v7 }
 0x5fe   :  { %837 = vst [vmem:[#allocation11] sm:$0xff] %v835_v8 }
 0x5ff   :  { %1318 = shalt.err (!%p1315_p2)
}
 0x600   :  { %s1319_s30 = scalar_lea.hbm %s1525_s8, 256 }
 0x601   :  { %p1320_p3 = scmp.ne.s32.totalorder %s1525_s8, %s1319_s30  ;;  %p1323_p4 = scmp.lt.u32.totalorder %s1319_s30, %s1525_s8 }
 0x603   :  { %p1325_p5 = pnand %p1323_p4, %p1320_p3 }
 0x605   :  { %1328 = shalt.err (!%p1325_p5)
}
 0x606   :  { %850 = dma.vmem_to_hbm [thread:$0]  %s845_s27, 256, %s1525_s8, [#allocation4], %s1340_s28, %s1340_s28, %s1341_s29  }
 0x607   :  { %1335 = dma.done.wait [#allocation4], 256  }
 0x608   :  { %1336 = vsyncadd [#allocation4], 4294967040 }
 0x609   :  { %854 = vsyncpa [#allocation3], 1 }
 0x60a   :  { %855 = vsyncpa [#allocation6], 1 }
 0x60b   :  { %856 = vsyncpa [#allocation9], 1 }
 0x60c   :  { %857 = vsyncpa [#allocation4], 1 }

</bundles_post_ra>
